<compile_context>
chip_gen: v5e
topology: v5e:2x2
jax: 0.10.0
libtpu: 0.0.40
codegen_flags: <defaults>
</compile_context>

<pallas_src>
import jax
import jax.numpy as jnp
from jax import lax
from jax.experimental import pallas as pl
from jax.experimental.pallas import tpu as pltpu


def _pick_time_chunk(T: int, B_pad: int, I: int, O_pad: int,
                     max_unroll: int = 32, vmem_budget_bytes: int = 8 << 20) -> int:
    """Largest time chunk whose double-buffered streamed tiles fit a conservative
    VMEM budget (valid across v5e/v6e/v7x), capped to keep the unrolled loop small."""
    per_step_bytes = 2 * 4 * B_pad * (I + O_pad)   # 2x buffered, f32: x chunk + out chunk
    tc = min(T, max_unroll, max(1, vmem_budget_bytes // max(per_step_bytes, 1)))
    return int(max(1, tc))


def _make_lstm_kernel(Tc: int, H: int, T: int, has_tail: bool):
    """Build the fused LSTM+Linear kernel for a static (Tc, H, T) configuration."""
    f32 = jnp.float32
    HI = jax.lax.Precision.HIGHEST

    def kernel(x_ref, w_ih_ref, b_g_ref, w_hh_ref, w_lin_ref, b_lin_ref,
               h0_ref, c0_ref, out_ref, hn_ref, cn_ref, h_sc, c_sc):
        # x_ref   : (Tc, B_pad, I)      streamed input chunk (time-major)
        # w_ih_ref: (I, 4H)             resident, gate order (i, f, g, o)
        # b_g_ref : (1, 4H)             b_ih + b_hh
        # w_hh_ref: (H, 4H)             resident recurrent weights (pre-transposed)
        # w_lin_ref:(H, O_pad)          resident Linear weights, lane-padded
        # b_lin_ref:(1, O_pad)          Linear bias, lane-padded
        # h0/c0   : (B_pad, H)          initial states
        # out_ref : (Tc, B_pad, O_pad)  projected outputs for this chunk
        # hn/cn   : (B_pad, H)          final states (written on last grid step only)
        # h_sc/c_sc: (B_pad, H) f32 VMEM scratch carrying the recurrence across chunks
        t_blk = pl.program_id(0)

        @pl.when(t_blk == 0)
        def _():
            h_sc[...] = h0_ref[...]
            c_sc[...] = c0_ref[...]

        B_pad = x_ref.shape[1]
        O_pad = out_ref.shape[2]

        # Hoist resident operands (and bias broadcasts) out of the unrolled loop.
        w_ih = w_ih_ref[...]
        w_hh = w_hh_ref[...]
        w_lin = w_lin_ref[...]
        b_g = jnp.broadcast_to(b_g_ref[...], (B_pad, 4 * H))
        b_lin = jnp.broadcast_to(b_lin_ref[...], (B_pad, O_pad))

        # Carry h/c as values (vregs) inside the chunk; scratch only at chunk edges.
        h = h_sc[...]
        c = c_sc[...]

        for tt in range(Tc):   # statically unrolled; static slices / static stores
            x_t = x_ref[tt]                                              # (B_pad, I)
            # One lane-dense (B_pad, 4H) gate pre-activation: input proj + recurrent
            # proj fused into two matmuls whose RHS is a single 128-lane tile.
            z = (jnp.dot(x_t, w_ih, preferred_element_type=f32, precision=HI)
                 + jnp.dot(h, w_hh, preferred_element_type=f32, precision=HI)
                 + b_g)
            sig = 1.0 / (1.0 + jnp.exp(-z))        # one full-vreg EUP sigmoid
            i_g = sig[:, 0 * H:1 * H]
            f_g = sig[:, 1 * H:2 * H]
            o_g = sig[:, 3 * H:4 * H]
            g_g = jnp.tanh(z[:, 2 * H:3 * H])      # one tanh on the g slice
            c_new = f_g * c + i_g * g_g
            h_new = o_g * jnp.tanh(c_new)

            if has_tail:
                # Zero-padded tail steps must not advance the recurrent state, so
                # hn/cn stay equal to the state after the last REAL time step.
                valid = (t_blk * Tc + tt) < T
                h = jnp.where(valid, h_new, h)
                c = jnp.where(valid, c_new, c)
            else:
                h, c = h_new, c_new

            # Fused output Linear: full (8,128) unmasked store; off the serial chain.
            out_ref[tt] = (jnp.dot(h_new, w_lin, preferred_element_type=f32,
                                   precision=HI) + b_lin)

        h_sc[...] = h
        c_sc[...] = c

        @pl.when(t_blk == pl.num_programs(0) - 1)
        def _():
            hn_ref[...] = h_sc[...]
            cn_ref[...] = c_sc[...]

    return kernel


@jax.jit
def lstm_module_forward(x, params, h0=None, c0=None):
    """Pallas equivalent of LstmModule.forward.

    Args:
      x: (B, T, input_size) float (batch_first=True).
      params: PyTorch-shaped parameters:
              'w_ih' (4H, I), 'w_hh' (4H, H), 'b_ih' (4H,), 'b_hh' (4H,),
              'w_lin' (O, H), 'b_lin' (O,).   Gate order (i, f, g, o).
      h0, c0: optional (1, B, H) initial states (num_layers=1).

    Returns:
      linear_out: (B, T, output_size)
      (hn, cn):   each (1, B, H)
    """
    f32 = jnp.float32
    B, T, I = x.shape
    H = params['w_hh'].shape[1]
    O = params['w_lin'].shape[0]

    B_pad = ((B + 7) // 8) * 8          # full-sublane tiles
    O_pad = ((O + 127) // 128) * 128    # lane-dense, unmasked output stores

    if h0 is None:
        h0 = jnp.zeros((1, B, H), f32)
    if c0 is None:
        c0 = jnp.zeros((1, B, H), f32)

    Tc = _pick_time_chunk(T, B_pad, I, O_pad)
    n_blk = (T + Tc - 1) // Tc
    T_pad = n_blk * Tc
    has_tail = (T_pad != T)

    # ---- Layout-only wrapper prep (all heavy math happens inside the kernel). ----
    x_tm = jnp.transpose(x.astype(f32), (1, 0, 2))                       # (T, B, I)
    x_tm = jnp.pad(x_tm, ((0, T_pad - T), (0, B_pad - B), (0, 0)))       # (T_pad, B_pad, I)

    w_ih_t = params['w_ih'].astype(f32).T                                # (I, 4H)
    w_hh_t = params['w_hh'].astype(f32).T                                # (H, 4H)
    b_g = (params['b_ih'] + params['b_hh']).astype(f32).reshape(1, 4 * H)
    w_lin_t = jnp.zeros((H, O_pad), f32).at[:, :O].set(params['w_lin'].astype(f32).T)
    b_lin_p = jnp.zeros((1, O_pad), f32).at[:, :O].set(params['b_lin'].astype(f32))

    h0_p = jnp.pad(h0[0].astype(f32), ((0, B_pad - B), (0, 0)))
    c0_p = jnp.pad(c0[0].astype(f32), ((0, B_pad - B), (0, 0)))

    kernel = _make_lstm_kernel(Tc, H, T, has_tail)

    out_pad, hn_p, cn_p = pl.pallas_call(
        kernel,
        out_shape=(
            jax.ShapeDtypeStruct((T_pad, B_pad, O_pad), f32),
            jax.ShapeDtypeStruct((B_pad, H), f32),
            jax.ShapeDtypeStruct((B_pad, H), f32),
        ),
        grid_spec=pltpu.PrefetchScalarGridSpec(
            num_scalar_prefetch=0,
            grid=(n_blk,),
            in_specs=[
                pl.BlockSpec((Tc, B_pad, I), lambda t: (t, 0, 0)),       # x (streamed)
                pl.BlockSpec((I, 4 * H), lambda t: (0, 0)),              # W_ih^T (resident)
                pl.BlockSpec((1, 4 * H), lambda t: (0, 0)),              # b_ih + b_hh
                pl.BlockSpec((H, 4 * H), lambda t: (0, 0)),              # W_hh^T (resident)
                pl.BlockSpec((H, O_pad), lambda t: (0, 0)),              # W_lin^T (lane-padded)
                pl.BlockSpec((1, O_pad), lambda t: (0, 0)),              # b_lin (lane-padded)
                pl.BlockSpec((B_pad, H), lambda t: (0, 0)),              # h0
                pl.BlockSpec((B_pad, H), lambda t: (0, 0)),              # c0
            ],
            out_specs=[
                pl.BlockSpec((Tc, B_pad, O_pad), lambda t: (t, 0, 0)),   # Linear(LSTM) out
                pl.BlockSpec((B_pad, H), lambda t: (0, 0)),              # hn (resident)
                pl.BlockSpec((B_pad, H), lambda t: (0, 0)),              # cn (resident)
            ],
            scratch_shapes=[
                pltpu.VMEM((B_pad, H), f32),   # h carry across chunks
                pltpu.VMEM((B_pad, H), f32),   # c carry across chunks
            ],
        ),
        compiler_params=pltpu.CompilerParams(
            dimension_semantics=("arbitrary",),      # time recurrence is sequential
            vmem_limit_bytes=32 * 1024 * 1024,
        ),
    )(x_tm, w_ih_t, b_g, w_hh_t, w_lin_t, b_lin_p, h0_p, c0_p)

    # Strip padding and restore batch_first (cheap layout-only XLA op).
    linear_out = jnp.transpose(out_pad[:T, :B, :O], (1, 0, 2))
    hn = hn_p[:B][None]
    cn = cn_p[:B][None]
    return linear_out, (hn, cn)


def _reference_forward(x, params, h0, c0):
    """Pure-JAX reference replicating torch.nn.LSTM + nn.Linear semantics (f32)."""
    HI = jax.lax.Precision.HIGHEST
    w_ih, w_hh = params['w_ih'], params['w_hh']
    b = params['b_ih'] + params['b_hh']
    H = w_hh.shape[1]

    def step(carry, x_t):
        h, c = carry
        gates = (jnp.dot(x_t, w_ih.T, precision=HI)
                 + jnp.dot(h, w_hh.T, precision=HI) + b)
        i = jax.nn.sigmoid(gates[:, 0 * H:1 * H])
        f = jax.nn.sigmoid(gates[:, 1 * H:2 * H])
        g = jnp.tanh(gates[:, 2 * H:3 * H])
        o = jax.nn.sigmoid(gates[:, 3 * H:4 * H])
        c_new = f * c + i * g
        h_new = o * jnp.tanh(c_new)
        return (h_new, c_new), h_new

    x_tm = jnp.transpose(x, (1, 0, 2))
    (hn, cn), hs = lax.scan(step, (h0[0], c0[0]), x_tm)
    lstm_out = jnp.transpose(hs, (1, 0, 2))
    lin = jnp.dot(lstm_out, params['w_lin'].T, precision=HI) + params['b_lin']
    return lin, (hn[None], cn[None])


def _init_params(key, input_size, hidden_size, output_size):
    """Deterministic PyTorch-style init: U(-1/sqrt(H), 1/sqrt(H))."""
    ks = jax.random.split(key, 6)
    k = 1.0 / jnp.sqrt(hidden_size)
    u = lambda kk, shape: jax.random.uniform(kk, shape, jnp.float32, -k, k)
    return {
        'w_ih': u(ks[0], (4 * hidden_size, input_size)),
        'w_hh': u(ks[1], (4 * hidden_size, hidden_size)),
        'b_ih': u(ks[2], (4 * hidden_size,)),
        'b_hh': u(ks[3], (4 * hidden_size,)),
        'w_lin': u(ks[4], (output_size, hidden_size)),
        'b_lin': u(ks[5], (output_size,)),
    }


if __name__ == "__main__":
    # Small shapes consistent with the module: batch=2, seq=8, input=16,
    # hidden=32, output=8, num_layers=1, dropout=0, batch_first=True.
    B, T, I, H, O = 2, 8, 16, 32, 8

    key = jax.random.PRNGKey(0)
    k_x, k_p = jax.random.split(key)
    x = jax.random.normal(k_x, (B, T, I), jnp.float32)
    params = _init_params(k_p, I, H, O)

    out, (hn, cn) = lstm_module_forward(x, params)
    jax.block_until_ready((out, hn, cn))

    # Quiet correctness check vs. pure-JAX LSTM + Linear reference.
    h0 = jnp.zeros((1, B, H), jnp.float32)
    c0 = jnp.zeros((1, B, H), jnp.float32)
    ref_out, (ref_hn, ref_cn) = _reference_forward(x, params, h0, c0)
    assert out.shape == (B, T, O) and hn.shape == (1, B, H) and cn.shape == (1, B, H)
    assert jnp.allclose(out, ref_out, atol=2e-4, rtol=2e-4)
    assert jnp.allclose(hn, ref_hn, atol=2e-4, rtol=2e-4)
    assert jnp.allclose(cn, ref_cn, atol=2e-4, rtol=2e-4)

    print("KERNEL_OK")
</pallas_src>

<mosaic_0001>
module attributes {stable_mosaic.version = 11 : i64} {
  func.func @kernel(%arg0: i32, %arg1: memref<8x8x16xf32, #tpu.memory_space<vmem>>, %arg2: memref<16x128xf32, #tpu.memory_space<vmem>>, %arg3: memref<1x128xf32, #tpu.memory_space<vmem>>, %arg4: memref<32x128xf32, #tpu.memory_space<vmem>>, %arg5: memref<32x128xf32, #tpu.memory_space<vmem>>, %arg6: memref<1x128xf32, #tpu.memory_space<vmem>>, %arg7: memref<8x32xf32, #tpu.memory_space<vmem>>, %arg8: memref<8x32xf32, #tpu.memory_space<vmem>>, %arg9: memref<8x8x128xf32, #tpu.memory_space<vmem>>, %arg10: memref<8x32xf32, #tpu.memory_space<vmem>>, %arg11: memref<8x32xf32, #tpu.memory_space<vmem>>, %arg12: memref<8x32xf32, #tpu.memory_space<vmem>>, %arg13: memref<8x32xf32, #tpu.memory_space<vmem>>) attributes {dimension_semantics = [#tpu.dimension_semantics<arbitrary>], iteration_bounds = array<i64: 1>, scalar_prefetch = 0 : i64, scratch_operands = 2 : i64, tpu.core_type = #tpu.core_type<tc>, window_params = [{transform_indices = @transform_0, window_bounds = array<i64: 8, 8, 16>}, {pipeline_mode = #tpu.pipeline_mode<synchronous>, transform_indices = @transform_1, window_bounds = array<i64: 16, 128>}, {pipeline_mode = #tpu.pipeline_mode<synchronous>, transform_indices = @transform_2, window_bounds = array<i64: 1, 128>}, {pipeline_mode = #tpu.pipeline_mode<synchronous>, transform_indices = @transform_3, window_bounds = array<i64: 32, 128>}, {pipeline_mode = #tpu.pipeline_mode<synchronous>, transform_indices = @transform_4, window_bounds = array<i64: 32, 128>}, {pipeline_mode = #tpu.pipeline_mode<synchronous>, transform_indices = @transform_5, window_bounds = array<i64: 1, 128>}, {pipeline_mode = #tpu.pipeline_mode<synchronous>, transform_indices = @transform_6, window_bounds = array<i64: 8, 32>}, {pipeline_mode = #tpu.pipeline_mode<synchronous>, transform_indices = @transform_7, window_bounds = array<i64: 8, 32>}, {transform_indices = @transform_8, window_bounds = array<i64: 8, 8, 128>}, {pipeline_mode = #tpu.pipeline_mode<synchronous>, transform_indices = @transform_9, window_bounds = array<i64: 8, 32>}, {pipeline_mode = #tpu.pipeline_mode<synchronous>, transform_indices = @transform_10, window_bounds = array<i64: 8, 32>}]} {
    %c0_i32 = arith.constant 0 : i32
    %0 = arith.cmpi eq, %arg0, %c0_i32 : i32
    %1 = arith.extui %0 : i1 to i32
    %c0_i32_0 = arith.constant 0 : i32
    %2 = arith.cmpi ne, %1, %c0_i32_0 : i32
    scf.if %2 {
      %c0_108 = arith.constant 0 : index
      %c0_109 = arith.constant 0 : index
      %243 = vector.load %arg7[%c0_108, %c0_109] : memref<8x32xf32, #tpu.memory_space<vmem>>, vector<8x32xf32>
      %c0_110 = arith.constant 0 : index
      %c0_111 = arith.constant 0 : index
      %244 = vector.load %arg12[%c0_110, %c0_111] : memref<8x32xf32, #tpu.memory_space<vmem>>, vector<8x32xf32>
      tpu.vector_store %arg12[%c0_110, %c0_111], %243 {strides = array<i32>} : memref<8x32xf32, #tpu.memory_space<vmem>>, vector<8x32xf32>,
      %c0_112 = arith.constant 0 : index
      %c0_113 = arith.constant 0 : index
      %245 = vector.load %arg8[%c0_112, %c0_113] : memref<8x32xf32, #tpu.memory_space<vmem>>, vector<8x32xf32>
      %c0_114 = arith.constant 0 : index
      %c0_115 = arith.constant 0 : index
      %246 = vector.load %arg13[%c0_114, %c0_115] : memref<8x32xf32, #tpu.memory_space<vmem>>, vector<8x32xf32>
      tpu.vector_store %arg13[%c0_114, %c0_115], %245 {strides = array<i32>} : memref<8x32xf32, #tpu.memory_space<vmem>>, vector<8x32xf32>,
    } else {
    }
    %c0 = arith.constant 0 : index
    %c0_1 = arith.constant 0 : index
    %3 = vector.load %arg2[%c0, %c0_1] : memref<16x128xf32, #tpu.memory_space<vmem>>, vector<16x128xf32>
    %c0_2 = arith.constant 0 : index
    %c0_3 = arith.constant 0 : index
    %4 = vector.load %arg4[%c0_2, %c0_3] : memref<32x128xf32, #tpu.memory_space<vmem>>, vector<32x128xf32>
    %c0_4 = arith.constant 0 : index
    %c0_5 = arith.constant 0 : index
    %5 = vector.load %arg5[%c0_4, %c0_5] : memref<32x128xf32, #tpu.memory_space<vmem>>, vector<32x128xf32>
    %c0_6 = arith.constant 0 : index
    %c0_7 = arith.constant 0 : index
    %6 = vector.load %arg3[%c0_6, %c0_7] : memref<1x128xf32, #tpu.memory_space<vmem>>, vector<1x128xf32>
    %7 = vector.shape_cast %6 : vector<1x128xf32> to vector<1x128xf32>
    %8 = vector.broadcast %7 : vector<1x128xf32> to vector<8x128xf32>
    %c0_8 = arith.constant 0 : index
    %c0_9 = arith.constant 0 : index
    %9 = vector.load %arg6[%c0_8, %c0_9] : memref<1x128xf32, #tpu.memory_space<vmem>>, vector<1x128xf32>
    %10 = vector.shape_cast %9 : vector<1x128xf32> to vector<1x128xf32>
    %11 = vector.broadcast %10 : vector<1x128xf32> to vector<8x128xf32>
    %c0_10 = arith.constant 0 : index
    %c0_11 = arith.constant 0 : index
    %12 = vector.load %arg12[%c0_10, %c0_11] : memref<8x32xf32, #tpu.memory_space<vmem>>, vector<8x32xf32>
    %c0_12 = arith.constant 0 : index
    %c0_13 = arith.constant 0 : index
    %13 = vector.load %arg13[%c0_12, %c0_13] : memref<8x32xf32, #tpu.memory_space<vmem>>, vector<8x32xf32>
    %c0_14 = arith.constant 0 : index
    %c0_15 = arith.constant 0 : index
    %c0_16 = arith.constant 0 : index
    %14 = vector.load %arg1[%c0_14, %c0_15, %c0_16] : memref<8x8x16xf32, #tpu.memory_space<vmem>>, vector<1x8x16xf32>
    %15 = vector.shape_cast %14 : vector<1x8x16xf32> to vector<8x16xf32>
    %cst = arith.constant dense<0.000000e+00> : vector<8x128xf32>
    %16 = tpu.matmul %15, %3, %cst {dimension_numbers = #tpu.dot_dimension_numbers<[1], [0], [0], [1], [0, 0, 1, 1], [], []>, precision = #tpu.contract_precision<fp32>} : vector<8x16xf32>, vector<16x128xf32>, vector<8x128xf32> -> vector<8x128xf32>
    %cst_17 = arith.constant dense<0.000000e+00> : vector<8x128xf32>
    %17 = tpu.matmul %12, %4, %cst_17 {dimension_numbers = #tpu.dot_dimension_numbers<[1], [0], [0], [1], [0, 0, 1, 1], [], []>, precision = #tpu.contract_precision<fp32>} : vector<8x32xf32>, vector<32x128xf32>, vector<8x128xf32> -> vector<8x128xf32>
    %18 = arith.addf %16, %17 : vector<8x128xf32>
    %19 = arith.addf %18, %8 : vector<8x128xf32>
    %cst_18 = arith.constant 0.000000e+00 : f32
    %20 = vector.broadcast %cst_18 : f32 to vector<8x128xf32>
    %21 = arith.subf %20, %19 : vector<8x128xf32>
    %22 = math.exp %21 : vector<8x128xf32>
    %cst_19 = arith.constant 1.000000e+00 : f32
    %23 = vector.broadcast %cst_19 : f32 to vector<8x128xf32>
    %24 = arith.addf %23, %22 : vector<8x128xf32>
    %cst_20 = arith.constant 1.000000e+00 : f32
    %25 = vector.broadcast %cst_20 : f32 to vector<8x128xf32>
    %26 = arith.divf %25, %24 : vector<8x128xf32>
    %27 = vector.extract_strided_slice %26 {offsets = [0, 0], sizes = [8, 32], strides = [1, 1]} : vector<8x128xf32> to vector<8x32xf32>
    %28 = vector.extract_strided_slice %26 {offsets = [0, 32], sizes = [8, 32], strides = [1, 1]} : vector<8x128xf32> to vector<8x32xf32>
    %29 = vector.extract_strided_slice %26 {offsets = [0, 96], sizes = [8, 32], strides = [1, 1]} : vector<8x128xf32> to vector<8x32xf32>
    %30 = vector.extract_strided_slice %19 {offsets = [0, 64], sizes = [8, 32], strides = [1, 1]} : vector<8x128xf32> to vector<8x32xf32>
    %31 = math.tanh %30 : vector<8x32xf32>
    %32 = arith.mulf %28, %13 : vector<8x32xf32>
    %33 = arith.mulf %27, %31 : vector<8x32xf32>
    %34 = arith.addf %32, %33 : vector<8x32xf32>
    %35 = math.tanh %34 : vector<8x32xf32>
    %36 = arith.mulf %29, %35 : vector<8x32xf32>
    %cst_21 = arith.constant dense<0.000000e+00> : vector<8x128xf32>
    %37 = tpu.matmul %36, %5, %cst_21 {dimension_numbers = #tpu.dot_dimension_numbers<[1], [0], [0], [1], [0, 0, 1, 1], [], []>, precision = #tpu.contract_precision<fp32>} : vector<8x32xf32>, vector<32x128xf32>, vector<8x128xf32> -> vector<8x128xf32>
    %38 = arith.addf %37, %11 : vector<8x128xf32>
    %c0_22 = arith.constant 0 : index
    %c0_23 = arith.constant 0 : index
    %c0_24 = arith.constant 0 : index
    %39 = vector.load %arg9[%c0_22, %c0_23, %c0_24] : memref<8x8x128xf32, #tpu.memory_space<vmem>>, vector<1x8x128xf32>
    %40 = vector.shape_cast %39 : vector<1x8x128xf32> to vector<8x128xf32>
    %41 = vector.shape_cast %38 : vector<8x128xf32> to vector<1x8x128xf32>
    tpu.vector_store %arg9[%c0_22, %c0_23, %c0_24], %41 {strides = array<i32>} : memref<8x8x128xf32, #tpu.memory_space<vmem>>, vector<1x8x128xf32>,
    %c1 = arith.constant 1 : index
    %c0_25 = arith.constant 0 : index
    %c0_26 = arith.constant 0 : index
    %42 = vector.load %arg1[%c1, %c0_25, %c0_26] : memref<8x8x16xf32, #tpu.memory_space<vmem>>, vector<1x8x16xf32>
    %43 = vector.shape_cast %42 : vector<1x8x16xf32> to vector<8x16xf32>
    %cst_27 = arith.constant dense<0.000000e+00> : vector<8x128xf32>
    %44 = tpu.matmul %43, %3, %cst_27 {dimension_numbers = #tpu.dot_dimension_numbers<[1], [0], [0], [1], [0, 0, 1, 1], [], []>, precision = #tpu.contract_precision<fp32>} : vector<8x16xf32>, vector<16x128xf32>, vector<8x128xf32> -> vector<8x128xf32>
    %cst_28 = arith.constant dense<0.000000e+00> : vector<8x128xf32>
    %45 = tpu.matmul %36, %4, %cst_28 {dimension_numbers = #tpu.dot_dimension_numbers<[1], [0], [0], [1], [0, 0, 1, 1], [], []>, precision = #tpu.contract_precision<fp32>} : vector<8x32xf32>, vector<32x128xf32>, vector<8x128xf32> -> vector<8x128xf32>
    %46 = arith.addf %44, %45 : vector<8x128xf32>
    %47 = arith.addf %46, %8 : vector<8x128xf32>
    %cst_29 = arith.constant 0.000000e+00 : f32
    %48 = vector.broadcast %cst_29 : f32 to vector<8x128xf32>
    %49 = arith.subf %48, %47 : vector<8x128xf32>
    %50 = math.exp %49 : vector<8x128xf32>
    %cst_30 = arith.constant 1.000000e+00 : f32
    %51 = vector.broadcast %cst_30 : f32 to vector<8x128xf32>
    %52 = arith.addf %51, %50 : vector<8x128xf32>
    %cst_31 = arith.constant 1.000000e+00 : f32
    %53 = vector.broadcast %cst_31 : f32 to vector<8x128xf32>
    %54 = arith.divf %53, %52 : vector<8x128xf32>
    %55 = vector.extract_strided_slice %54 {offsets = [0, 0], sizes = [8, 32], strides = [1, 1]} : vector<8x128xf32> to vector<8x32xf32>
    %56 = vector.extract_strided_slice %54 {offsets = [0, 32], sizes = [8, 32], strides = [1, 1]} : vector<8x128xf32> to vector<8x32xf32>
    %57 = vector.extract_strided_slice %54 {offsets = [0, 96], sizes = [8, 32], strides = [1, 1]} : vector<8x128xf32> to vector<8x32xf32>
    %58 = vector.extract_strided_slice %47 {offsets = [0, 64], sizes = [8, 32], strides = [1, 1]} : vector<8x128xf32> to vector<8x32xf32>
    %59 = math.tanh %58 : vector<8x32xf32>
    %60 = arith.mulf %56, %34 : vector<8x32xf32>
    %61 = arith.mulf %55, %59 : vector<8x32xf32>
    %62 = arith.addf %60, %61 : vector<8x32xf32>
    %63 = math.tanh %62 : vector<8x32xf32>
    %64 = arith.mulf %57, %63 : vector<8x32xf32>
    %cst_32 = arith.constant dense<0.000000e+00> : vector<8x128xf32>
    %65 = tpu.matmul %64, %5, %cst_32 {dimension_numbers = #tpu.dot_dimension_numbers<[1], [0], [0], [1], [0, 0, 1, 1], [], []>, precision = #tpu.contract_precision<fp32>} : vector<8x32xf32>, vector<32x128xf32>, vector<8x128xf32> -> vector<8x128xf32>
    %66 = arith.addf %65, %11 : vector<8x128xf32>
    %c1_33 = arith.constant 1 : index
    %c0_34 = arith.constant 0 : index
    %c0_35 = arith.constant 0 : index
    %67 = vector.load %arg9[%c1_33, %c0_34, %c0_35] : memref<8x8x128xf32, #tpu.memory_space<vmem>>, vector<1x8x128xf32>
    %68 = vector.shape_cast %67 : vector<1x8x128xf32> to vector<8x128xf32>
    %69 = vector.shape_cast %66 : vector<8x128xf32> to vector<1x8x128xf32>
    tpu.vector_store %arg9[%c1_33, %c0_34, %c0_35], %69 {strides = array<i32>} : memref<8x8x128xf32, #tpu.memory_space<vmem>>, vector<1x8x128xf32>,
    %c2 = arith.constant 2 : index
    %c0_36 = arith.constant 0 : index
    %c0_37 = arith.constant 0 : index
    %70 = vector.load %arg1[%c2, %c0_36, %c0_37] : memref<8x8x16xf32, #tpu.memory_space<vmem>>, vector<1x8x16xf32>
    %71 = vector.shape_cast %70 : vector<1x8x16xf32> to vector<8x16xf32>
    %cst_38 = arith.constant dense<0.000000e+00> : vector<8x128xf32>
    %72 = tpu.matmul %71, %3, %cst_38 {dimension_numbers = #tpu.dot_dimension_numbers<[1], [0], [0], [1], [0, 0, 1, 1], [], []>, precision = #tpu.contract_precision<fp32>} : vector<8x16xf32>, vector<16x128xf32>, vector<8x128xf32> -> vector<8x128xf32>
    %cst_39 = arith.constant dense<0.000000e+00> : vector<8x128xf32>
    %73 = tpu.matmul %64, %4, %cst_39 {dimension_numbers = #tpu.dot_dimension_numbers<[1], [0], [0], [1], [0, 0, 1, 1], [], []>, precision = #tpu.contract_precision<fp32>} : vector<8x32xf32>, vector<32x128xf32>, vector<8x128xf32> -> vector<8x128xf32>
    %74 = arith.addf %72, %73 : vector<8x128xf32>
    %75 = arith.addf %74, %8 : vector<8x128xf32>
    %cst_40 = arith.constant 0.000000e+00 : f32
    %76 = vector.broadcast %cst_40 : f32 to vector<8x128xf32>
    %77 = arith.subf %76, %75 : vector<8x128xf32>
    %78 = math.exp %77 : vector<8x128xf32>
    %cst_41 = arith.constant 1.000000e+00 : f32
    %79 = vector.broadcast %cst_41 : f32 to vector<8x128xf32>
    %80 = arith.addf %79, %78 : vector<8x128xf32>
    %cst_42 = arith.constant 1.000000e+00 : f32
    %81 = vector.broadcast %cst_42 : f32 to vector<8x128xf32>
    %82 = arith.divf %81, %80 : vector<8x128xf32>
    %83 = vector.extract_strided_slice %82 {offsets = [0, 0], sizes = [8, 32], strides = [1, 1]} : vector<8x128xf32> to vector<8x32xf32>
    %84 = vector.extract_strided_slice %82 {offsets = [0, 32], sizes = [8, 32], strides = [1, 1]} : vector<8x128xf32> to vector<8x32xf32>
    %85 = vector.extract_strided_slice %82 {offsets = [0, 96], sizes = [8, 32], strides = [1, 1]} : vector<8x128xf32> to vector<8x32xf32>
    %86 = vector.extract_strided_slice %75 {offsets = [0, 64], sizes = [8, 32], strides = [1, 1]} : vector<8x128xf32> to vector<8x32xf32>
    %87 = math.tanh %86 : vector<8x32xf32>
    %88 = arith.mulf %84, %62 : vector<8x32xf32>
    %89 = arith.mulf %83, %87 : vector<8x32xf32>
    %90 = arith.addf %88, %89 : vector<8x32xf32>
    %91 = math.tanh %90 : vector<8x32xf32>
    %92 = arith.mulf %85, %91 : vector<8x32xf32>
    %cst_43 = arith.constant dense<0.000000e+00> : vector<8x128xf32>
    %93 = tpu.matmul %92, %5, %cst_43 {dimension_numbers = #tpu.dot_dimension_numbers<[1], [0], [0], [1], [0, 0, 1, 1], [], []>, precision = #tpu.contract_precision<fp32>} : vector<8x32xf32>, vector<32x128xf32>, vector<8x128xf32> -> vector<8x128xf32>
    %94 = arith.addf %93, %11 : vector<8x128xf32>
    %c2_44 = arith.constant 2 : index
    %c0_45 = arith.constant 0 : index
    %c0_46 = arith.constant 0 : index
    %95 = vector.load %arg9[%c2_44, %c0_45, %c0_46] : memref<8x8x128xf32, #tpu.memory_space<vmem>>, vector<1x8x128xf32>
    %96 = vector.shape_cast %95 : vector<1x8x128xf32> to vector<8x128xf32>
    %97 = vector.shape_cast %94 : vector<8x128xf32> to vector<1x8x128xf32>
    tpu.vector_store %arg9[%c2_44, %c0_45, %c0_46], %97 {strides = array<i32>} : memref<8x8x128xf32, #tpu.memory_space<vmem>>, vector<1x8x128xf32>,
    %c3 = arith.constant 3 : index
    %c0_47 = arith.constant 0 : index
    %c0_48 = arith.constant 0 : index
    %98 = vector.load %arg1[%c3, %c0_47, %c0_48] : memref<8x8x16xf32, #tpu.memory_space<vmem>>, vector<1x8x16xf32>
    %99 = vector.shape_cast %98 : vector<1x8x16xf32> to vector<8x16xf32>
    %cst_49 = arith.constant dense<0.000000e+00> : vector<8x128xf32>
    %100 = tpu.matmul %99, %3, %cst_49 {dimension_numbers = #tpu.dot_dimension_numbers<[1], [0], [0], [1], [0, 0, 1, 1], [], []>, precision = #tpu.contract_precision<fp32>} : vector<8x16xf32>, vector<16x128xf32>, vector<8x128xf32> -> vector<8x128xf32>
    %cst_50 = arith.constant dense<0.000000e+00> : vector<8x128xf32>
    %101 = tpu.matmul %92, %4, %cst_50 {dimension_numbers = #tpu.dot_dimension_numbers<[1], [0], [0], [1], [0, 0, 1, 1], [], []>, precision = #tpu.contract_precision<fp32>} : vector<8x32xf32>, vector<32x128xf32>, vector<8x128xf32> -> vector<8x128xf32>
    %102 = arith.addf %100, %101 : vector<8x128xf32>
    %103 = arith.addf %102, %8 : vector<8x128xf32>
    %cst_51 = arith.constant 0.000000e+00 : f32
    %104 = vector.broadcast %cst_51 : f32 to vector<8x128xf32>
    %105 = arith.subf %104, %103 : vector<8x128xf32>
    %106 = math.exp %105 : vector<8x128xf32>
    %cst_52 = arith.constant 1.000000e+00 : f32
    %107 = vector.broadcast %cst_52 : f32 to vector<8x128xf32>
    %108 = arith.addf %107, %106 : vector<8x128xf32>
    %cst_53 = arith.constant 1.000000e+00 : f32
    %109 = vector.broadcast %cst_53 : f32 to vector<8x128xf32>
    %110 = arith.divf %109, %108 : vector<8x128xf32>
    %111 = vector.extract_strided_slice %110 {offsets = [0, 0], sizes = [8, 32], strides = [1, 1]} : vector<8x128xf32> to vector<8x32xf32>
    %112 = vector.extract_strided_slice %110 {offsets = [0, 32], sizes = [8, 32], strides = [1, 1]} : vector<8x128xf32> to vector<8x32xf32>
    %113 = vector.extract_strided_slice %110 {offsets = [0, 96], sizes = [8, 32], strides = [1, 1]} : vector<8x128xf32> to vector<8x32xf32>
    %114 = vector.extract_strided_slice %103 {offsets = [0, 64], sizes = [8, 32], strides = [1, 1]} : vector<8x128xf32> to vector<8x32xf32>
    %115 = math.tanh %114 : vector<8x32xf32>
    %116 = arith.mulf %112, %90 : vector<8x32xf32>
    %117 = arith.mulf %111, %115 : vector<8x32xf32>
    %118 = arith.addf %116, %117 : vector<8x32xf32>
    %119 = math.tanh %118 : vector<8x32xf32>
    %120 = arith.mulf %113, %119 : vector<8x32xf32>
    %cst_54 = arith.constant dense<0.000000e+00> : vector<8x128xf32>
    %121 = tpu.matmul %120, %5, %cst_54 {dimension_numbers = #tpu.dot_dimension_numbers<[1], [0], [0], [1], [0, 0, 1, 1], [], []>, precision = #tpu.contract_precision<fp32>} : vector<8x32xf32>, vector<32x128xf32>, vector<8x128xf32> -> vector<8x128xf32>
    %122 = arith.addf %121, %11 : vector<8x128xf32>
    %c3_55 = arith.constant 3 : index
    %c0_56 = arith.constant 0 : index
    %c0_57 = arith.constant 0 : index
    %123 = vector.load %arg9[%c3_55, %c0_56, %c0_57] : memref<8x8x128xf32, #tpu.memory_space<vmem>>, vector<1x8x128xf32>
    %124 = vector.shape_cast %123 : vector<1x8x128xf32> to vector<8x128xf32>
    %125 = vector.shape_cast %122 : vector<8x128xf32> to vector<1x8x128xf32>
    tpu.vector_store %arg9[%c3_55, %c0_56, %c0_57], %125 {strides = array<i32>} : memref<8x8x128xf32, #tpu.memory_space<vmem>>, vector<1x8x128xf32>,
    %c4 = arith.constant 4 : index
    %c0_58 = arith.constant 0 : index
    %c0_59 = arith.constant 0 : index
    %126 = vector.load %arg1[%c4, %c0_58, %c0_59] : memref<8x8x16xf32, #tpu.memory_space<vmem>>, vector<1x8x16xf32>
    %127 = vector.shape_cast %126 : vector<1x8x16xf32> to vector<8x16xf32>
    %cst_60 = arith.constant dense<0.000000e+00> : vector<8x128xf32>
    %128 = tpu.matmul %127, %3, %cst_60 {dimension_numbers = #tpu.dot_dimension_numbers<[1], [0], [0], [1], [0, 0, 1, 1], [], []>, precision = #tpu.contract_precision<fp32>} : vector<8x16xf32>, vector<16x128xf32>, vector<8x128xf32> -> vector<8x128xf32>
    %cst_61 = arith.constant dense<0.000000e+00> : vector<8x128xf32>
    %129 = tpu.matmul %120, %4, %cst_61 {dimension_numbers = #tpu.dot_dimension_numbers<[1], [0], [0], [1], [0, 0, 1, 1], [], []>, precision = #tpu.contract_precision<fp32>} : vector<8x32xf32>, vector<32x128xf32>, vector<8x128xf32> -> vector<8x128xf32>
    %130 = arith.addf %128, %129 : vector<8x128xf32>
    %131 = arith.addf %130, %8 : vector<8x128xf32>
    %cst_62 = arith.constant 0.000000e+00 : f32
    %132 = vector.broadcast %cst_62 : f32 to vector<8x128xf32>
    %133 = arith.subf %132, %131 : vector<8x128xf32>
    %134 = math.exp %133 : vector<8x128xf32>
    %cst_63 = arith.constant 1.000000e+00 : f32
    %135 = vector.broadcast %cst_63 : f32 to vector<8x128xf32>
    %136 = arith.addf %135, %134 : vector<8x128xf32>
    %cst_64 = arith.constant 1.000000e+00 : f32
    %137 = vector.broadcast %cst_64 : f32 to vector<8x128xf32>
    %138 = arith.divf %137, %136 : vector<8x128xf32>
    %139 = vector.extract_strided_slice %138 {offsets = [0, 0], sizes = [8, 32], strides = [1, 1]} : vector<8x128xf32> to vector<8x32xf32>
    %140 = vector.extract_strided_slice %138 {offsets = [0, 32], sizes = [8, 32], strides = [1, 1]} : vector<8x128xf32> to vector<8x32xf32>
    %141 = vector.extract_strided_slice %138 {offsets = [0, 96], sizes = [8, 32], strides = [1, 1]} : vector<8x128xf32> to vector<8x32xf32>
    %142 = vector.extract_strided_slice %131 {offsets = [0, 64], sizes = [8, 32], strides = [1, 1]} : vector<8x128xf32> to vector<8x32xf32>
    %143 = math.tanh %142 : vector<8x32xf32>
    %144 = arith.mulf %140, %118 : vector<8x32xf32>
    %145 = arith.mulf %139, %143 : vector<8x32xf32>
    %146 = arith.addf %144, %145 : vector<8x32xf32>
    %147 = math.tanh %146 : vector<8x32xf32>
    %148 = arith.mulf %141, %147 : vector<8x32xf32>
    %cst_65 = arith.constant dense<0.000000e+00> : vector<8x128xf32>
    %149 = tpu.matmul %148, %5, %cst_65 {dimension_numbers = #tpu.dot_dimension_numbers<[1], [0], [0], [1], [0, 0, 1, 1], [], []>, precision = #tpu.contract_precision<fp32>} : vector<8x32xf32>, vector<32x128xf32>, vector<8x128xf32> -> vector<8x128xf32>
    %150 = arith.addf %149, %11 : vector<8x128xf32>
    %c4_66 = arith.constant 4 : index
    %c0_67 = arith.constant 0 : index
    %c0_68 = arith.constant 0 : index
    %151 = vector.load %arg9[%c4_66, %c0_67, %c0_68] : memref<8x8x128xf32, #tpu.memory_space<vmem>>, vector<1x8x128xf32>
    %152 = vector.shape_cast %151 : vector<1x8x128xf32> to vector<8x128xf32>
    %153 = vector.shape_cast %150 : vector<8x128xf32> to vector<1x8x128xf32>
    tpu.vector_store %arg9[%c4_66, %c0_67, %c0_68], %153 {strides = array<i32>} : memref<8x8x128xf32, #tpu.memory_space<vmem>>, vector<1x8x128xf32>,
    %c5 = arith.constant 5 : index
    %c0_69 = arith.constant 0 : index
    %c0_70 = arith.constant 0 : index
    %154 = vector.load %arg1[%c5, %c0_69, %c0_70] : memref<8x8x16xf32, #tpu.memory_space<vmem>>, vector<1x8x16xf32>
    %155 = vector.shape_cast %154 : vector<1x8x16xf32> to vector<8x16xf32>
    %cst_71 = arith.constant dense<0.000000e+00> : vector<8x128xf32>
    %156 = tpu.matmul %155, %3, %cst_71 {dimension_numbers = #tpu.dot_dimension_numbers<[1], [0], [0], [1], [0, 0, 1, 1], [], []>, precision = #tpu.contract_precision<fp32>} : vector<8x16xf32>, vector<16x128xf32>, vector<8x128xf32> -> vector<8x128xf32>
    %cst_72 = arith.constant dense<0.000000e+00> : vector<8x128xf32>
    %157 = tpu.matmul %148, %4, %cst_72 {dimension_numbers = #tpu.dot_dimension_numbers<[1], [0], [0], [1], [0, 0, 1, 1], [], []>, precision = #tpu.contract_precision<fp32>} : vector<8x32xf32>, vector<32x128xf32>, vector<8x128xf32> -> vector<8x128xf32>
    %158 = arith.addf %156, %157 : vector<8x128xf32>
    %159 = arith.addf %158, %8 : vector<8x128xf32>
    %cst_73 = arith.constant 0.000000e+00 : f32
    %160 = vector.broadcast %cst_73 : f32 to vector<8x128xf32>
    %161 = arith.subf %160, %159 : vector<8x128xf32>
    %162 = math.exp %161 : vector<8x128xf32>
    %cst_74 = arith.constant 1.000000e+00 : f32
    %163 = vector.broadcast %cst_74 : f32 to vector<8x128xf32>
    %164 = arith.addf %163, %162 : vector<8x128xf32>
    %cst_75 = arith.constant 1.000000e+00 : f32
    %165 = vector.broadcast %cst_75 : f32 to vector<8x128xf32>
    %166 = arith.divf %165, %164 : vector<8x128xf32>
    %167 = vector.extract_strided_slice %166 {offsets = [0, 0], sizes = [8, 32], strides = [1, 1]} : vector<8x128xf32> to vector<8x32xf32>
    %168 = vector.extract_strided_slice %166 {offsets = [0, 32], sizes = [8, 32], strides = [1, 1]} : vector<8x128xf32> to vector<8x32xf32>
    %169 = vector.extract_strided_slice %166 {offsets = [0, 96], sizes = [8, 32], strides = [1, 1]} : vector<8x128xf32> to vector<8x32xf32>
    %170 = vector.extract_strided_slice %159 {offsets = [0, 64], sizes = [8, 32], strides = [1, 1]} : vector<8x128xf32> to vector<8x32xf32>
    %171 = math.tanh %170 : vector<8x32xf32>
    %172 = arith.mulf %168, %146 : vector<8x32xf32>
    %173 = arith.mulf %167, %171 : vector<8x32xf32>
    %174 = arith.addf %172, %173 : vector<8x32xf32>
    %175 = math.tanh %174 : vector<8x32xf32>
    %176 = arith.mulf %169, %175 : vector<8x32xf32>
    %cst_76 = arith.constant dense<0.000000e+00> : vector<8x128xf32>
    %177 = tpu.matmul %176, %5, %cst_76 {dimension_numbers = #tpu.dot_dimension_numbers<[1], [0], [0], [1], [0, 0, 1, 1], [], []>, precision = #tpu.contract_precision<fp32>} : vector<8x32xf32>, vector<32x128xf32>, vector<8x128xf32> -> vector<8x128xf32>
    %178 = arith.addf %177, %11 : vector<8x128xf32>
    %c5_77 = arith.constant 5 : index
    %c0_78 = arith.constant 0 : index
    %c0_79 = arith.constant 0 : index
    %179 = vector.load %arg9[%c5_77, %c0_78, %c0_79] : memref<8x8x128xf32, #tpu.memory_space<vmem>>, vector<1x8x128xf32>
    %180 = vector.shape_cast %179 : vector<1x8x128xf32> to vector<8x128xf32>
    %181 = vector.shape_cast %178 : vector<8x128xf32> to vector<1x8x128xf32>
    tpu.vector_store %arg9[%c5_77, %c0_78, %c0_79], %181 {strides = array<i32>} : memref<8x8x128xf32, #tpu.memory_space<vmem>>, vector<1x8x128xf32>,
    %c6 = arith.constant 6 : index
    %c0_80 = arith.constant 0 : index
    %c0_81 = arith.constant 0 : index
    %182 = vector.load %arg1[%c6, %c0_80, %c0_81] : memref<8x8x16xf32, #tpu.memory_space<vmem>>, vector<1x8x16xf32>
    %183 = vector.shape_cast %182 : vector<1x8x16xf32> to vector<8x16xf32>
    %cst_82 = arith.constant dense<0.000000e+00> : vector<8x128xf32>
    %184 = tpu.matmul %183, %3, %cst_82 {dimension_numbers = #tpu.dot_dimension_numbers<[1], [0], [0], [1], [0, 0, 1, 1], [], []>, precision = #tpu.contract_precision<fp32>} : vector<8x16xf32>, vector<16x128xf32>, vector<8x128xf32> -> vector<8x128xf32>
    %cst_83 = arith.constant dense<0.000000e+00> : vector<8x128xf32>
    %185 = tpu.matmul %176, %4, %cst_83 {dimension_numbers = #tpu.dot_dimension_numbers<[1], [0], [0], [1], [0, 0, 1, 1], [], []>, precision = #tpu.contract_precision<fp32>} : vector<8x32xf32>, vector<32x128xf32>, vector<8x128xf32> -> vector<8x128xf32>
    %186 = arith.addf %184, %185 : vector<8x128xf32>
    %187 = arith.addf %186, %8 : vector<8x128xf32>
    %cst_84 = arith.constant 0.000000e+00 : f32
    %188 = vector.broadcast %cst_84 : f32 to vector<8x128xf32>
    %189 = arith.subf %188, %187 : vector<8x128xf32>
    %190 = math.exp %189 : vector<8x128xf32>
    %cst_85 = arith.constant 1.000000e+00 : f32
    %191 = vector.broadcast %cst_85 : f32 to vector<8x128xf32>
    %192 = arith.addf %191, %190 : vector<8x128xf32>
    %cst_86 = arith.constant 1.000000e+00 : f32
    %193 = vector.broadcast %cst_86 : f32 to vector<8x128xf32>
    %194 = arith.divf %193, %192 : vector<8x128xf32>
    %195 = vector.extract_strided_slice %194 {offsets = [0, 0], sizes = [8, 32], strides = [1, 1]} : vector<8x128xf32> to vector<8x32xf32>
    %196 = vector.extract_strided_slice %194 {offsets = [0, 32], sizes = [8, 32], strides = [1, 1]} : vector<8x128xf32> to vector<8x32xf32>
    %197 = vector.extract_strided_slice %194 {offsets = [0, 96], sizes = [8, 32], strides = [1, 1]} : vector<8x128xf32> to vector<8x32xf32>
    %198 = vector.extract_strided_slice %187 {offsets = [0, 64], sizes = [8, 32], strides = [1, 1]} : vector<8x128xf32> to vector<8x32xf32>
    %199 = math.tanh %198 : vector<8x32xf32>
    %200 = arith.mulf %196, %174 : vector<8x32xf32>
    %201 = arith.mulf %195, %199 : vector<8x32xf32>
    %202 = arith.addf %200, %201 : vector<8x32xf32>
    %203 = math.tanh %202 : vector<8x32xf32>
    %204 = arith.mulf %197, %203 : vector<8x32xf32>
    %cst_87 = arith.constant dense<0.000000e+00> : vector<8x128xf32>
    %205 = tpu.matmul %204, %5, %cst_87 {dimension_numbers = #tpu.dot_dimension_numbers<[1], [0], [0], [1], [0, 0, 1, 1], [], []>, precision = #tpu.contract_precision<fp32>} : vector<8x32xf32>, vector<32x128xf32>, vector<8x128xf32> -> vector<8x128xf32>
    %206 = arith.addf %205, %11 : vector<8x128xf32>
    %c6_88 = arith.constant 6 : index
    %c0_89 = arith.constant 0 : index
    %c0_90 = arith.constant 0 : index
    %207 = vector.load %arg9[%c6_88, %c0_89, %c0_90] : memref<8x8x128xf32, #tpu.memory_space<vmem>>, vector<1x8x128xf32>
    %208 = vector.shape_cast %207 : vector<1x8x128xf32> to vector<8x128xf32>
    %209 = vector.shape_cast %206 : vector<8x128xf32> to vector<1x8x128xf32>
    tpu.vector_store %arg9[%c6_88, %c0_89, %c0_90], %209 {strides = array<i32>} : memref<8x8x128xf32, #tpu.memory_space<vmem>>, vector<1x8x128xf32>,
    %c7 = arith.constant 7 : index
    %c0_91 = arith.constant 0 : index
    %c0_92 = arith.constant 0 : index
    %210 = vector.load %arg1[%c7, %c0_91, %c0_92] : memref<8x8x16xf32, #tpu.memory_space<vmem>>, vector<1x8x16xf32>
    %211 = vector.shape_cast %210 : vector<1x8x16xf32> to vector<8x16xf32>
    %cst_93 = arith.constant dense<0.000000e+00> : vector<8x128xf32>
    %212 = tpu.matmul %211, %3, %cst_93 {dimension_numbers = #tpu.dot_dimension_numbers<[1], [0], [0], [1], [0, 0, 1, 1], [], []>, precision = #tpu.contract_precision<fp32>} : vector<8x16xf32>, vector<16x128xf32>, vector<8x128xf32> -> vector<8x128xf32>
    %cst_94 = arith.constant dense<0.000000e+00> : vector<8x128xf32>
    %213 = tpu.matmul %204, %4, %cst_94 {dimension_numbers = #tpu.dot_dimension_numbers<[1], [0], [0], [1], [0, 0, 1, 1], [], []>, precision = #tpu.contract_precision<fp32>} : vector<8x32xf32>, vector<32x128xf32>, vector<8x128xf32> -> vector<8x128xf32>
    %214 = arith.addf %212, %213 : vector<8x128xf32>
    %215 = arith.addf %214, %8 : vector<8x128xf32>
    %cst_95 = arith.constant 0.000000e+00 : f32
    %216 = vector.broadcast %cst_95 : f32 to vector<8x128xf32>
    %217 = arith.subf %216, %215 : vector<8x128xf32>
    %218 = math.exp %217 : vector<8x128xf32>
    %cst_96 = arith.constant 1.000000e+00 : f32
    %219 = vector.broadcast %cst_96 : f32 to vector<8x128xf32>
    %220 = arith.addf %219, %218 : vector<8x128xf32>
    %cst_97 = arith.constant 1.000000e+00 : f32
    %221 = vector.broadcast %cst_97 : f32 to vector<8x128xf32>
    %222 = arith.divf %221, %220 : vector<8x128xf32>
    %223 = vector.extract_strided_slice %222 {offsets = [0, 0], sizes = [8, 32], strides = [1, 1]} : vector<8x128xf32> to vector<8x32xf32>
    %224 = vector.extract_strided_slice %222 {offsets = [0, 32], sizes = [8, 32], strides = [1, 1]} : vector<8x128xf32> to vector<8x32xf32>
    %225 = vector.extract_strided_slice %222 {offsets = [0, 96], sizes = [8, 32], strides = [1, 1]} : vector<8x128xf32> to vector<8x32xf32>
    %226 = vector.extract_strided_slice %215 {offsets = [0, 64], sizes = [8, 32], strides = [1, 1]} : vector<8x128xf32> to vector<8x32xf32>
    %227 = math.tanh %226 : vector<8x32xf32>
    %228 = arith.mulf %224, %202 : vector<8x32xf32>
    %229 = arith.mulf %223, %227 : vector<8x32xf32>
    %230 = arith.addf %228, %229 : vector<8x32xf32>
    %231 = math.tanh %230 : vector<8x32xf32>
    %232 = arith.mulf %225, %231 : vector<8x32xf32>
    %cst_98 = arith.constant dense<0.000000e+00> : vector<8x128xf32>
    %233 = tpu.matmul %232, %5, %cst_98 {dimension_numbers = #tpu.dot_dimension_numbers<[1], [0], [0], [1], [0, 0, 1, 1], [], []>, precision = #tpu.contract_precision<fp32>} : vector<8x32xf32>, vector<32x128xf32>, vector<8x128xf32> -> vector<8x128xf32>
    %234 = arith.addf %233, %11 : vector<8x128xf32>
    %c7_99 = arith.constant 7 : index
    %c0_100 = arith.constant 0 : index
    %c0_101 = arith.constant 0 : index
    %235 = vector.load %arg9[%c7_99, %c0_100, %c0_101] : memref<8x8x128xf32, #tpu.memory_space<vmem>>, vector<1x8x128xf32>
    %236 = vector.shape_cast %235 : vector<1x8x128xf32> to vector<8x128xf32>
    %237 = vector.shape_cast %234 : vector<8x128xf32> to vector<1x8x128xf32>
    tpu.vector_store %arg9[%c7_99, %c0_100, %c0_101], %237 {strides = array<i32>} : memref<8x8x128xf32, #tpu.memory_space<vmem>>, vector<1x8x128xf32>,
    %c0_102 = arith.constant 0 : index
    %c0_103 = arith.constant 0 : index
    %238 = vector.load %arg12[%c0_102, %c0_103] : memref<8x32xf32, #tpu.memory_space<vmem>>, vector<8x32xf32>
    tpu.vector_store %arg12[%c0_102, %c0_103], %232 {strides = array<i32>} : memref<8x32xf32, #tpu.memory_space<vmem>>, vector<8x32xf32>,
    %c0_104 = arith.constant 0 : index
    %c0_105 = arith.constant 0 : index
    %239 = vector.load %arg13[%c0_104, %c0_105] : memref<8x32xf32, #tpu.memory_space<vmem>>, vector<8x32xf32>
    tpu.vector_store %arg13[%c0_104, %c0_105], %230 {strides = array<i32>} : memref<8x32xf32, #tpu.memory_space<vmem>>, vector<8x32xf32>,
    %c0_i32_106 = arith.constant 0 : i32
    %240 = arith.cmpi eq, %arg0, %c0_i32_106 : i32
    %241 = arith.extui %240 : i1 to i32
    %c0_i32_107 = arith.constant 0 : i32
    %242 = arith.cmpi ne, %241, %c0_i32_107 : i32
    scf.if %242 {
      %c0_108 = arith.constant 0 : index
      %c0_109 = arith.constant 0 : index
      %243 = vector.load %arg12[%c0_108, %c0_109] : memref<8x32xf32, #tpu.memory_space<vmem>>, vector<8x32xf32>
      %c0_110 = arith.constant 0 : index
      %c0_111 = arith.constant 0 : index
      %244 = vector.load %arg10[%c0_110, %c0_111] : memref<8x32xf32, #tpu.memory_space<vmem>>, vector<8x32xf32>
      tpu.vector_store %arg10[%c0_110, %c0_111], %243 {strides = array<i32>} : memref<8x32xf32, #tpu.memory_space<vmem>>, vector<8x32xf32>,
      %c0_112 = arith.constant 0 : index
      %c0_113 = arith.constant 0 : index
      %245 = vector.load %arg13[%c0_112, %c0_113] : memref<8x32xf32, #tpu.memory_space<vmem>>, vector<8x32xf32>
      %c0_114 = arith.constant 0 : index
      %c0_115 = arith.constant 0 : index
      %246 = vector.load %arg11[%c0_114, %c0_115] : memref<8x32xf32, #tpu.memory_space<vmem>>, vector<8x32xf32>
      tpu.vector_store %arg11[%c0_114, %c0_115], %245 {strides = array<i32>} : memref<8x32xf32, #tpu.memory_space<vmem>>, vector<8x32xf32>,
    } else {
    }
    return
  }
  func.func @transform_0(%arg0: i32) -> (i32, i32, i32) {
    %c0_i32 = arith.constant 0 : i32
    %c0_i32_0 = arith.constant 0 : i32
    %c0_i32_1 = arith.constant 0 : i32
    return %arg0, %c0_i32, %c0_i32_0 : i32, i32, i32
  }
  func.func @transform_1(%arg0: i32) -> (i32, i32) {
    %c0_i32 = arith.constant 0 : i32
    %c0_i32_0 = arith.constant 0 : i32
    %c0_i32_1 = arith.constant 0 : i32
    return %c0_i32, %c0_i32_0 : i32, i32
  }
  func.func @transform_2(%arg0: i32) -> (i32, i32) {
    %c0_i32 = arith.constant 0 : i32
    %c0_i32_0 = arith.constant 0 : i32
    %c0_i32_1 = arith.constant 0 : i32
    return %c0_i32, %c0_i32_0 : i32, i32
  }
  func.func @transform_3(%arg0: i32) -> (i32, i32) {
    %c0_i32 = arith.constant 0 : i32
    %c0_i32_0 = arith.constant 0 : i32
    %c0_i32_1 = arith.constant 0 : i32
    return %c0_i32, %c0_i32_0 : i32, i32
  }
  func.func @transform_4(%arg0: i32) -> (i32, i32) {
    %c0_i32 = arith.constant 0 : i32
    %c0_i32_0 = arith.constant 0 : i32
    %c0_i32_1 = arith.constant 0 : i32
    return %c0_i32, %c0_i32_0 : i32, i32
  }
  func.func @transform_5(%arg0: i32) -> (i32, i32) {
    %c0_i32 = arith.constant 0 : i32
    %c0_i32_0 = arith.constant 0 : i32
    %c0_i32_1 = arith.constant 0 : i32
    return %c0_i32, %c0_i32_0 : i32, i32
  }
  func.func @transform_6(%arg0: i32) -> (i32, i32) {
    %c0_i32 = arith.constant 0 : i32
    %c0_i32_0 = arith.constant 0 : i32
    %c0_i32_1 = arith.constant 0 : i32
    return %c0_i32, %c0_i32_0 : i32, i32
  }
  func.func @transform_7(%arg0: i32) -> (i32, i32) {
    %c0_i32 = arith.constant 0 : i32
    %c0_i32_0 = arith.constant 0 : i32
    %c0_i32_1 = arith.constant 0 : i32
    return %c0_i32, %c0_i32_0 : i32, i32
  }
  func.func @transform_8(%arg0: i32) -> (i32, i32, i32) {
    %c0_i32 = arith.constant 0 : i32
    %c0_i32_0 = arith.constant 0 : i32
    %c0_i32_1 = arith.constant 0 : i32
    return %arg0, %c0_i32, %c0_i32_0 : i32, i32, i32
  }
  func.func @transform_9(%arg0: i32) -> (i32, i32) {
    %c0_i32 = arith.constant 0 : i32
    %c0_i32_0 = arith.constant 0 : i32
    %c0_i32_1 = arith.constant 0 : i32
    return %c0_i32, %c0_i32_0 : i32, i32
  }
  func.func @transform_10(%arg0: i32) -> (i32, i32) {
    %c0_i32 = arith.constant 0 : i32
    %c0_i32_0 = arith.constant 0 : i32
    %c0_i32_1 = arith.constant 0 : i32
    return %c0_i32, %c0_i32_0 : i32, i32
  }
}

</mosaic_0001>

<bundles_post_ra>
// kernel: lstm_module_forward.1
= control target key start
LH: loop header
LB: loop body
LE: loop exit
PB: predicated region body
PF: predicated region fallthrough
CT: control target
= control target key end

     0   :  { %vm37_vm0 = vcmask 261120   ;;  %vm251_vm1 = vcmask 130048   ;;  %s4812_s29 = smov 64   ;;  %s4813_s30 = smov 32   ;;  %s5688_s3 = inlined_call_operand.vmem [shape: f32[32,128], index: 3, kind: input, shape index: {}]   ;;  %s5689_s6 = inlined_call_operand.vmem [shape: f32[8,32], index: 6, kind: input, shape index: {}, may-alias: {6,7}]   ;;  %s5690_s1 = inlined_call_operand.vmem [shape: f32[16,128], index: 1, kind: input, shape index: {}]   ;;  %s5691_s0 = inlined_call_operand.vmem [shape: f32[8,8,16], index: 0, kind: input, shape index: {}]   ;;  %s5692_s2 = inlined_call_operand.vmem [shape: f32[1,128], index: 2, kind: input, shape index: {}]   ;;  %s5693_s7 = inlined_call_operand.vmem [shape: f32[8,32], index: 7, kind: input, shape index: {}, may-alias: {6,7}]   ;;  %s5694_s4 = inlined_call_operand.vmem [shape: f32[32,128], index: 4, kind: input, shape index: {}]   ;;  %s5695_s5 = inlined_call_operand.vmem [shape: f32[1,128], index: 5, kind: input, shape index: {}]   ;;  %s5696_s8 = inlined_call_operand.vmem [shape: f32[8,8,128], index: 8, kind: output, shape index: {0}]   ;;  %s5697_s10 = inlined_call_operand.vmem [shape: f32[8,32], index: 10, kind: output, shape index: {2}]   ;;  %s5698_s9 = inlined_call_operand.vmem [shape: f32[8,32], index: 9, kind: output, shape index: {1}]  }
   0x1   :  { %v46_v0 = vld [vmem:[%s5688_s3 + $0x18] sm:$0xff]  ;;  %v45_v1 = vld [vmem:[%s5688_s3 + $0x10] sm:$0xff]  ;;  %v44_v2 = vld [vmem:[%s5688_s3 + $0x8] sm:$0xff] }
   0x2   :  { %v4879_v3 = vand.u32 4294901760, %v46_v0  ;;  %v4881_v4 = vand.u32 4294901760, %v45_v1  ;;  %v4883_v5 = vand.u32 4294901760, %v44_v2  ;;  %v43_v6 = vld [vmem:[%s5688_s3] sm:$0xff]  ;;  %v42_v8 = vld [vmem:[%s5690_s1 + $0x8] sm:$0xff] }
   0x3   :  { %v36_v7 = vld [vmem:[%s5689_s6] sm:$0xff]  ;;  %v4894_v9 = vand.u32 4294901760, %v43_v6  ;;  %v4897_v10 = vand.u32 4294901760, %v42_v8 }
   0x4   :  { %38 = vst.msk [vmem:[#allocation2] sm:$0xff] %vm37_vm0, %v36_v7  ;;  %v41_v11 = vld [vmem:[%s5690_s1] sm:$0xff]  ;;  %v4906_v13 = vsub.f32 %v46_v0, %v4879_v3  ;;  %v4909_v14 = vsub.f32 %v45_v1, %v4881_v4  ;;  %179 = vmatpush.msra.mxu3 %v4879_v3  ;;  %79 = vmatpush.msra.mxu0 %v4879_v3 }
   0x5   :  { %v61_v12 = vld [vmem:[%s5691_s0] sm:$0xff]  ;;  %v4914_v15 = vsub.f32 %v44_v2, %v4883_v5  ;;  %v4916_v16 = vand.u32 4294901760, %v41_v11  ;;  %v4919_v17 = vsub.f32 %v43_v6, %v4894_v9  ;;  %v4922_v18 = vsub.f32 %v42_v8, %v4897_v10 }
   0x6   :  { %v253_v19 = vsel %vm251_vm1, %v61_v12, 0  ;;  %150 = vmatpush.msra.mxu2 %v4906_v13  ;;  %v4927_v20 = vand.u32 4294901760, %v4906_v13  ;;  %181 = vmatpush.msra.mxu3 %v4881_v4  ;;  %v4931_v21 = vand.u32 4294901760, %v4909_v14  ;;  %v39_v55 = vld [vmem:[%s5693_s7] sm:$0xff] }
   0x7   :  { %v4934_v22 = vand.u32 4294901760, %v4914_v15  ;;  %v4937_v23 = vsub.f32 %v41_v11, %v4916_v16  ;;  %81 = vmatpush.msra.mxu0 %v4881_v4  ;;  %v4941_v24 = vand.u32 4294901760, %v4919_v17  ;;  %v4944_v25 = vand.u32 4294901760, %v4922_v18  ;;  %40 = vst.msk [vmem:[#allocation3] sm:$0xff] %vm37_vm0, %v39_v55 }
   0x8   :  { %v4946_v26 = vand.u32 4294901760, %v253_v19  ;;  %153 = vmatpush.msra.mxu2 %v4909_v14  ;;  %v110_v27 = vsub.f32 %v4906_v13, %v4927_v20  ;;  %v116_v28 = vsub.f32 %v4909_v14, %v4931_v21  ;;  %183 = vmatpush.msra.mxu3 %v4883_v5 }
   0x9   :  { %v122_v29 = vsub.f32 %v4914_v15, %v4934_v22  ;;  %v4957_v30 = vand.u32 4294901760, %v4937_v23  ;;  %83 = vmatpush.msra.mxu0 %v4883_v5  ;;  %v299_v31 = vsub.f32 %v4922_v18, %v4944_v25  ;;  %v128_v36 = vsub.f32 %v4919_v17, %v4941_v24 }
   0xa   :  { %v274_v32 = vsub.f32 %v253_v19, %v4946_v26  ;;  %v4963_v33 = vand.u32 4294901760, %v110_v27  ;;  %156 = vmatpush.msra.mxu2 %v4914_v15  ;;  %v4966_v34 = vand.u32 4294901760, %v116_v28  ;;  %185 = vmatpush.msra.mxu3 %v4894_v9  ;;  %v5018_v27 = vld [vmem:[%s5692_s2] ss:$0 sm:$0xff] }
   0xb   :  { %v59_v35 = vld [vmem:[#allocation2] sm:$0xff]  ;;  %v305_v37 = vsub.f32 %v4937_v23, %v4957_v30  ;;  %85 = vmatpush.msra.mxu0 %v4894_v9  ;;  %v4975_v39 = vand.u32 4294901760, %v299_v31  ;;  %v4979_v41 = vand.u32 4294901760, %v122_v29  ;;  %v4986_v45 = vand.u32 4294901760, %v128_v36 }
   0xc   :  { %v64_v38 = vsel %vm37_vm0, %v59_v35, 0  ;;  %112 = vmatpush.msra.mxu1 %v4963_v33  ;;  %159 = vmatpush.msra.mxu2 %v4919_v17  ;;  %v275_v42 = vand.u32 4294901760, %v274_v32 }
   0xd   :  { %v86_v40 = vand.u32 4294901760, %v64_v38  ;;  %208 = vmatpush.msrb.mxu0 %v4927_v20  ;;  %v4983_v43 = vand.u32 4294901760, %v305_v37  ;;  %301 = vmatpush.msrb.mxu3 %v4975_v39 }
   0xe   :  { %270 = vmatpush.msrb.mxu2 %v4897_v10  ;;  %118 = vmatpush.msra.mxu1 %v4966_v34  ;;  %v276_v47 = vsub.f32 %v274_v32, %v275_v42 }
   0xf   :  { %v87_v44 = vsub.f32 %v64_v38, %v86_v40  ;;  %212 = vmatpush.msrb.mxu0 %v4931_v21  ;;  %307 = vmatpush.msrb.mxu3 %v4983_v43 }
  0x10   :  { %272 = vmatpush.msrb.mxu2 %v4916_v16  ;;  %124 = vmatpush.msra.mxu1 %v4979_v41  ;;  %v277_v50 = vand.u32 4294901760, %v276_v47 }
  0x11   :  { %162 = vmatmul.f32.vlgmr.msra.gmra.mxu2 %v87_v44  ;;  %v88_v46 = vand.u32 4294901760, %v87_v44  ;;  %216 = vmatpush.msrb.mxu0 %v4934_v22 }
  0x12   :  { %130 = vmatpush.msra.mxu1 %v4986_v45  ;;  %381 = vmatpush.msra.mxu2 %v4944_v25 }
  0x13   :  { %189 = vmatmul.f32.vlgmr.msra.gmra.mxu3 %v88_v46  ;;  %v89_v48 = vsub.f32 %v87_v44, %v88_v46  ;;  %132 = vmatmul.f32.vlgmr.msra.gmra.mxu1 %v86_v40 }
  0x14   :  { %220 = vmatpush.msrb.mxu0 %v4941_v24  ;;  %239 = vmatpush.msrb.mxu1 %v4879_v3 }
  0x15   :  { %v90_v49 = vand.u32 4294901760, %v89_v48  ;;  %406 = vmatpush.msra.mxu3 %v4897_v10  ;;  %385 = vmatpush.msra.mxu2 %v4957_v30 }
  0x16   :  { %241 = vmatpush.msrb.mxu1 %v4881_v4 }
  0x17   :  { %91 = vmatmul.f32.vlgmr.msra.gmra.mxu0 %v90_v49  ;;  %408 = vmatpush.msra.mxu3 %v4916_v16 }
  0x18   :  { %329 = vmatpush.msra.mxu0 %v4922_v18  ;;  %243 = vmatpush.msrb.mxu1 %v4883_v5 }
  0x19   :  { %278 = vmatmul.f32.vlgmr.msrb.gmra.mxu2 %v277_v50 }
  0x1a   :  { %332 = vmatpush.msra.mxu0 %v4937_v23  ;;  %245 = vmatpush.msrb.mxu1 %v4894_v9 }
  0x1b   :  { %309 = vmatmul.f32.vlgmr.msrb.gmra.mxu3 %v4946_v26  ;;  %247 = vmatmul.f32.vlgmr.msrb.gmra.mxu1 %v86_v40 }
  0x1c   :  { %354 = vmatpush.msra.mxu1 %v4897_v10 }
  0x1e   :  { %356 = vmatpush.msra.mxu1 %v4916_v16 }
  0x1f   :  { %222 = vmatmul.f32.vlgmr.msrb.gmra.mxu0 %v86_v40 }
  0x21   :  { %387 = vmatmul.f32.vlgmr.msra.gmra.mxu2 %v4946_v26 }
  0x23   :  { %410 = vmatmul.f32.vlgmr.msra.gmra.mxu3 %v4946_v26  ;;  %360 = vmatmul.f32.vlgmr.msra.gmra.mxu1 %v275_v42 }
  0x27   :  { %335 = vmatmul.f32.vlgmr.msra.gmra.mxu0 %v274_v32  ;;  %v60_v32 = vld [vmem:[#allocation3] sm:$0xff] }
  0x90   :  { %v133_v51 = vpop.f32.mrf.mxu1 }
  0x94   :  { %v92_v52 = vpop.f32.mrf.mxu0  ;;  %v163_v53 = vpop.f32.mrf.mxu2 }
  0x95   :  { %v134_v54 = vadd.f32 %v133_v51, %v92_v52 }
  0x96   :  { %v190_v56 = vpop.f32.mrf.mxu3 }
  0x97   :  { %v164_v57 = vadd.f32 %v163_v53, %v134_v54 }
  0x98   :  { %v248_v58 = vpop.f32.mrf.mxu1 }
  0x99   :  { %v191_v59 = vadd.f32 %v190_v56, %v164_v57 }
  0x9c   :  { %v223_v60 = vpop.f32.mrf.mxu0  ;;  %v279_v61 = vpop.f32.mrf.mxu2 }
  0x9d   :  { %v224_v62 = vadd.f32 %v223_v60, %v191_v59  ;;  %v50_v60 = vld [vmem:[%s5694_s4 + $0x18] sm:$0xff] }
  0x9e   :  { %v310_v63 = vpop.f32.mrf.mxu3 }
  0x9f   :  { %v249_v0 = vadd.f32 %v248_v58, %v224_v62  ;;  %v5034_v62 = vand.u32 4294901760, %v50_v60 }
  0xa0   :  { %v361_v7 = vpop.f32.mrf.mxu1 }
  0xa1   :  { %v280_v1 = vadd.f32 %v279_v61, %v249_v0  ;;  %v49_v61 = vld [vmem:[%s5694_s4 + $0x10] sm:$0xff]  ;;  %v5039_v0 = vsub.f32 %v50_v60, %v5034_v62  ;;  %574 = vmatpush.msrb.mxu3 %v5034_v62  ;;  %474 = vmatpush.msrb.mxu0 %v5034_v62 }
  0xa3   :  { %v311_v2 = vadd.f32 %v310_v63, %v280_v1  ;;  %v5036_v63 = vand.u32 4294901760, %v49_v61  ;;  %545 = vmatpush.msrb.mxu2 %v5039_v0 }
  0xa4   :  { %v336_v6 = vpop.f32.mrf.mxu0  ;;  %v388_v11 = vpop.f32.mrf.mxu2 }
  0xa5   :  { %v337_v8 = vadd.f32 %v336_v6, %v311_v2  ;;  %v5042_v1 = vsub.f32 %v49_v61, %v5036_v63  ;;  %v5047_v2 = vand.u32 4294901760, %v5039_v0  ;;  %576 = vmatpush.msrb.mxu3 %v5036_v63  ;;  %476 = vmatpush.msrb.mxu0 %v5036_v63 }
  0xa6   :  { %v411_v19 = vpop.f32.mrf.mxu3 }
  0xa7   :  { %v362_v12 = vadd.f32 %v361_v7, %v337_v8  ;;  %v5050_v6 = vand.u32 4294901760, %v5042_v1  ;;  %v505_v7 = vsub.f32 %v5039_v0, %v5047_v2  ;;  %548 = vmatpush.msrb.mxu2 %v5042_v1 }
  0xa9   :  { %v389_v26 = vadd.f32 %v388_v11, %v362_v12  ;;  %v511_v8 = vsub.f32 %v5042_v1, %v5050_v6  ;;  %v5060_v11 = vand.u32 4294901760, %v505_v7 }
  0xab   :  { %v412_v28 = vadd.f32 %v411_v19, %v389_v26  ;;  %v5062_v12 = vand.u32 4294901760, %v511_v8  ;;  %507 = vmatpush.msrb.mxu1 %v5060_v11  ;;  %v5189_v8 = vld [vmem:[%s5695_s5] ss:$0 sm:$0xff] }
  0xac   :  { %5707 = vst [vmem:[#allocation5_spill] sm:$0xff] %v5189_v8 }
  0xad   :  { %v414_v29 = vadd.f32 %v5018_v27, %v412_v28  ;;  %513 = vmatpush.msrb.mxu1 %v5062_v12  ;;  %v48_v28 = vld [vmem:[%s5694_s4 + $0x8] sm:$0xff] }
  0xaf   :  { %4745 = vtanh.f32 %v414_v29  ;;  %v415_v35 = vsub.f32 0.0, %v414_v29  ;;  %v5070_v29 = vand.u32 4294901760, %v48_v28 }
  0xb1   :  { %v416_v36 = vmul.f32 1.442695, %v415_v35  ;;  %578 = vmatpush.msrb.mxu3 %v5070_v29  ;;  %478 = vmatpush.msrb.mxu0 %v5070_v29 }
  0xb3   :  { %4747 = vpow2.f32 %v416_v36 }
  0xb5   :  { %v4746_v31 = vpop.eup %4745 }
  0xb6   :  { %441 = vrot.lane.b32.xlu0 %v4746_v31, %s4812_s29  ;;  %v47_v31 = vld [vmem:[%s5694_s4] sm:$0xff] }
  0xb7   :  { %v5078_v35 = vand.u32 4294901760, %v47_v31 }
  0xb9   :  { %v4748_v37 = vpop.eup %4747  ;;  %580 = vmatpush.msrb.mxu3 %v5078_v35  ;;  %480 = vmatpush.msrb.mxu0 %v5078_v35 }
  0xba   :  { %v418_v38 = vadd.f32 1.0, %v4748_v37  ;;  %v5086_v37 = vsub.f32 %v47_v31, %v5078_v35 }
  0xbb   :  { %695 = vmatpush.msra.mxu3 %v4963_v33  ;;  %603 = vmatpush.msra.mxu0 %v5047_v2 }
  0xbc   :  { %4749 = vrcp.f32 %v418_v38  ;;  %v430_v48 = vand.u32 2147483648, %v418_v38  ;;  %vm424_vm3 = vweird.f32 %v418_v38  ;;  %v428_v49 = vand.u32 2147483647, %v418_v38 }
  0xbd   :  { %701 = vmatpush.msra.mxu3 %v4966_v34  ;;  %607 = vmatpush.msra.mxu0 %v5050_v6 }
  0xbe   :  { %436 = vrot.lane.b32.xlu0 %v60_v32, %s4813_s30  ;;  %v431_v51 = vor.u32 1.1754944e-38, %v430_v48  ;;  %vm429_vm5 = vcmp.eq.f32.partialorder %v428_v49, 8.507059e+37  ;;  %v5076_v32 = vsub.f32 %v48_v28, %v5070_v29 }
  0xbf   :  { %707 = vmatpush.msra.mxu3 %v4979_v41 }
  0xc0   :  { %v5083_v36 = vand.u32 4294901760, %v5076_v32  ;;  %551 = vmatpush.msrb.mxu2 %v5076_v32 }
  0xc1   :  { %713 = vmatpush.msra.mxu3 %v4986_v45 }
  0xc2   :  { %v4750_v40 = vpop.eup %4749  ;;  %554 = vmatpush.msrb.mxu2 %v5086_v37  ;;  %611 = vmatpush.msra.mxu0 %v5083_v36 }
  0xc3   :  { %v420_v42 = vmul.f32 %v4750_v40, %v418_v38  ;;  %vm425_vm2 = vweird.f32 %v4750_v40  ;;  %v517_v38 = vsub.f32 %v5076_v32, %v5083_v36 }
  0xc4   :  { %vm426_vm4 = vmor %vm424_vm3, %vm425_vm2  ;;  %662 = vmatpush.msra.mxu2 %v4879_v3 }
  0xc5   :  { %v421_v44 = vsub.f32 1.0, %v420_v42  ;;  %v5101_v42 = vand.u32 4294901760, %v517_v38 }
  0xc6   :  { %664 = vmatpush.msra.mxu2 %v4881_v4 }
  0xc7   :  { %v422_v46 = vmul.f32 %v4750_v40, %v421_v44  ;;  %519 = vmatpush.msrb.mxu1 %v5101_v42 }
  0xc8   :  { %666 = vmatpush.msra.mxu2 %v4883_v5 }
  0xc9   :  { %v423_v47 = vadd.f32 %v4750_v40, %v422_v46 }
  0xca   :  { %668 = vmatpush.msra.mxu2 %v4894_v9 }
  0xcb   :  { %v427_v50 = vsel %vm426_vm4, %v4750_v40, %v423_v47  ;;  %v5095_v40 = vand.u32 4294901760, %v5086_v37 }
  0xcc   :  { %v432_v53 = vsel %vm429_vm5, %v431_v51, %v427_v50 }
  0xcd   :  { %5706 = vst [vmem:[#allocation4_spill] sm:$0xff] %v5095_v40  ;;  %v523_v44 = vsub.f32 %v5086_v37, %v5095_v40  ;;  %615 = vmatpush.msra.mxu0 %v5095_v40 }
  0xcf   :  { %v5109_v46 = vand.u32 4294901760, %v523_v44 }
  0xd1   :  { %525 = vmatpush.msrb.mxu1 %v5109_v46 }
  0xd3   :  { %634 = vmatpush.msra.mxu1 %v5034_v62 }
  0xd5   :  { %636 = vmatpush.msra.mxu1 %v5036_v63 }
  0xd7   :  { %638 = vmatpush.msra.mxu1 %v5070_v29 }
  0xd9   :  { %640 = vmatpush.msra.mxu1 %v5078_v35 }
 0x128   :  { %v442_v52 = vpop.permute.xlu0 %441 }
 0x129   :  { %v444_v54 = vmul.f32 %v442_v52, %v432_v53 }
 0x12b   :  { %446 = vrot.lane.b32.xlu1 %v444_v54, %s4813_s30  ;;  %v4726_v54 = vld [vmem:[%s5691_s0 + $0x8] sm:$0xff] }
 0x130   :  { %v437_v55 = vpop.permute.xlu0 %436 }
 0x131   :  { %v439_v56 = vmul.f32 %v437_v55, %v432_v53  ;;  %v835_v55 = vsel %vm251_vm1, %v4726_v54, 0 }
 0x19d   :  { %v447_v57 = vpop.permute.xlu1 %446 }
 0x19e   :  { %v5024_v58 = vadd.f32 %v447_v57, %v439_v56  ;;  %v855_v56 = vand.u32 4294901760, %v835_v55 }
 0x1a0   :  { %4751 = vtanh.f32 %v5024_v58  ;;  %v856_v57 = vsub.f32 %v835_v55, %v855_v56 }
 0x1a6   :  { %v4752_v59 = vpop.eup %4751 }
 0x1a7   :  { %452 = vrot.lane.b32.xlu1 %v4752_v59, %s4812_s29  ;;  %v857_v59 = vand.u32 4294901760, %v856_v57 }
 0x1a9   :  { %v858_v60 = vsub.f32 %v856_v57, %v857_v59 }
 0x1ab   :  { %v859_v61 = vand.u32 4294901760, %v858_v60 }
 0x219   :  { %v453_v19 = vpop.permute.xlu1 %452 }
 0x21a   :  { %v455_v26 = vmul.f32 %v453_v19, %v432_v53 }
 0x21c   :  { %457 = vrot.lane.b32.xlu2 %v455_v26, %s4813_s30 }
 0x276   :  { %v458_v47 = vpop.permute.xlu2 %457 }
 0x277   :  { %v459_v48 = vsel %vm37_vm0, %v458_v47, 0 }
 0x278   :  { %v481_v49 = vand.u32 4294901760, %v459_v48 }
 0x27a   :  { %v482_v50 = vsub.f32 %v459_v48, %v481_v49  ;;  %527 = vmatmul.f32.vlgmr.msrb.gmra.mxu1 %v481_v49 }
 0x27b   :  { %762 = vmatpush.msrb.mxu1 %v4879_v3 }
 0x27c   :  { %557 = vmatmul.f32.vlgmr.msrb.gmra.mxu2 %v482_v50  ;;  %v483_v51 = vand.u32 4294901760, %v482_v50 }
 0x27d   :  { %764 = vmatpush.msrb.mxu1 %v4881_v4  ;;  %791 = vmatpush.msrb.mxu2 %v4927_v20 }
 0x27e   :  { %584 = vmatmul.f32.vlgmr.msrb.gmra.mxu3 %v483_v51  ;;  %v484_v52 = vsub.f32 %v482_v50, %v483_v51 }
 0x27f   :  { %766 = vmatpush.msrb.mxu1 %v4883_v5  ;;  %795 = vmatpush.msrb.mxu2 %v4931_v21 }
 0x280   :  { %v485_v53 = vand.u32 4294901760, %v484_v52  ;;  %822 = vmatpush.msrb.mxu3 %v4879_v3 }
 0x281   :  { %768 = vmatpush.msrb.mxu1 %v4894_v9  ;;  %799 = vmatpush.msrb.mxu2 %v4934_v22 }
 0x282   :  { %486 = vmatmul.f32.vlgmr.msrb.gmra.mxu0 %v485_v53  ;;  %642 = vmatmul.f32.vlgmr.msra.gmra.mxu1 %v481_v49 }
 0x283   :  { %824 = vmatpush.msrb.mxu3 %v4881_v4  ;;  %733 = vmatpush.msrb.mxu0 %v4906_v13 }
 0x284   :  { %674 = vmatmul.f32.vlgmr.msra.gmra.mxu2 %v485_v53  ;;  %883 = vmatpush.msra.mxu1 %v4975_v39 }
 0x285   :  { %803 = vmatpush.msrb.mxu2 %v4941_v24  ;;  %826 = vmatpush.msrb.mxu3 %v4883_v5 }
 0x286   :  { %715 = vmatmul.f32.vlgmr.msra.gmra.mxu3 %v481_v49  ;;  %736 = vmatpush.msrb.mxu0 %v4909_v14 }
 0x287   :  { %828 = vmatpush.msrb.mxu3 %v4894_v9  ;;  %911 = vmatpush.msra.mxu2 %v4922_v18 }
 0x288   :  { %739 = vmatpush.msrb.mxu0 %v4914_v15  ;;  %889 = vmatpush.msra.mxu1 %v4983_v43 }
 0x289   :  { %936 = vmatpush.msra.mxu3 %v4897_v10  ;;  %914 = vmatpush.msra.mxu2 %v4937_v23 }
 0x28a   :  { %617 = vmatmul.f32.vlgmr.msra.gmra.mxu0 %v481_v49  ;;  %772 = vmatmul.f32.vlgmr.msrb.gmra.mxu1 %v483_v51 }
 0x28b   :  { %742 = vmatpush.msrb.mxu0 %v4919_v17  ;;  %938 = vmatpush.msra.mxu3 %v4916_v16 }
 0x28c   :  { %805 = vmatmul.f32.vlgmr.msrb.gmra.mxu2 %v481_v49  ;;  %988 = vmatpush.msrb.mxu1 %v4897_v10 }
 0x28d   :  { %852 = vmatpush.msra.mxu0 %v4897_v10  ;;  %1052 = vmatpush.msrb.mxu2 %v5034_v62 }
 0x28e   :  { %830 = vmatmul.f32.vlgmr.msrb.gmra.mxu3 %v481_v49  ;;  %990 = vmatpush.msrb.mxu1 %v4916_v16 }
 0x28f   :  { %854 = vmatpush.msra.mxu0 %v4916_v16  ;;  %1085 = vmatpush.msrb.mxu3 %v5060_v11 }
 0x290   :  { %1054 = vmatpush.msrb.mxu2 %v5036_v63 }
 0x291   :  { %1091 = vmatpush.msrb.mxu3 %v5062_v12 }
 0x292   :  { %745 = vmatmul.f32.vlgmr.msrb.gmra.mxu0 %v482_v50  ;;  %891 = vmatmul.f32.vlgmr.msra.gmra.mxu1 %v855_v56 }
 0x293   :  { %963 = vmatpush.msrb.mxu0 %v4944_v25  ;;  %1097 = vmatpush.msrb.mxu3 %v5101_v42 }
 0x294   :  { %917 = vmatmul.f32.vlgmr.msra.gmra.mxu2 %v856_v57  ;;  %1152 = vmatpush.msra.mxu1 %v5034_v62 }
 0x295   :  { %967 = vmatpush.msrb.mxu0 %v4957_v30  ;;  %1103 = vmatpush.msrb.mxu3 %v5109_v46 }
 0x296   :  { %942 = vmatmul.f32.vlgmr.msra.gmra.mxu3 %v857_v59  ;;  %1154 = vmatpush.msra.mxu1 %v5036_v63 }
 0x297   :  { %1212 = vmatpush.msra.mxu3 %v5034_v62  ;;  %1056 = vmatpush.msrb.mxu2 %v5070_v29 }
 0x298   :  { %1156 = vmatpush.msra.mxu1 %v5070_v29 }
 0x299   :  { %1214 = vmatpush.msra.mxu3 %v5036_v63  ;;  %1058 = vmatpush.msrb.mxu2 %v5078_v35 }
 0x29a   :  { %860 = vmatmul.f32.vlgmr.msra.gmra.mxu0 %v859_v61  ;;  %992 = vmatmul.f32.vlgmr.msrb.gmra.mxu1 %v855_v56 }
 0x29b   :  { %1123 = vmatpush.msra.mxu0 %v5039_v0  ;;  %1158 = vmatpush.msra.mxu1 %v5078_v35 }
 0x29c   :  { %1216 = vmatpush.msra.mxu3 %v5070_v29  ;;  %1181 = vmatpush.msra.mxu2 %v5047_v2 }
 0x29d   :  { %1274 = vmatpush.msrb.mxu1 %v4963_v33  ;;  %1126 = vmatpush.msra.mxu0 %v5042_v1 }
 0x29e   :  { %1218 = vmatpush.msra.mxu3 %v5078_v35  ;;  %1185 = vmatpush.msra.mxu2 %v5050_v6 }
 0x29f   :  { %1280 = vmatpush.msrb.mxu1 %v4966_v34  ;;  %1129 = vmatpush.msra.mxu0 %v5076_v32 }
 0x2a0   :  { %1189 = vmatpush.msra.mxu2 %v5083_v36 }
 0x2a1   :  { %1286 = vmatpush.msrb.mxu1 %v4979_v41  ;;  %1132 = vmatpush.msra.mxu0 %v5086_v37 }
 0x2a2   :  { %969 = vmatmul.f32.vlgmr.msrb.gmra.mxu0 %v855_v56  ;;  %1193 = vmatpush.msra.mxu2 %v5095_v40 }
 0x2a3   :  { %1292 = vmatpush.msrb.mxu1 %v4986_v45  ;;  %1241 = vmatpush.msrb.mxu0 %v4879_v3 }
 0x2a5   :  { %1243 = vmatpush.msrb.mxu0 %v4881_v4 }
 0x2a7   :  { %1245 = vmatpush.msrb.mxu0 %v4883_v5 }
 0x2a9   :  { %1247 = vmatpush.msrb.mxu0 %v4894_v9 }
 0x2f7   :  { %v528_v7 = vpop.f32.mrf.mxu1 }
 0x2ff   :  { %v487_v19 = vpop.f32.mrf.mxu0  ;;  %v558_v26 = vpop.f32.mrf.mxu2 }
 0x300   :  { %v488_v28 = vadd.f32 %v5189_v8, %v487_v19  ;;  %v643_v44 = vpop.f32.mrf.mxu1 }
 0x301   :  { %v585_v31 = vpop.f32.mrf.mxu3 }
 0x302   :  { %v529_v38 = vadd.f32 %v528_v7, %v488_v28 }
 0x304   :  { %v559_v47 = vadd.f32 %v558_v26, %v529_v38 }
 0x306   :  { %v586_v48 = vadd.f32 %v585_v31, %v559_v47 }
 0x307   :  { %v618_v49 = vpop.f32.mrf.mxu0  ;;  %v675_v50 = vpop.f32.mrf.mxu2 }
 0x308   :  { %v619_v51 = vadd.f32 %v618_v49, %v586_v48  ;;  %v773_v54 = vpop.f32.mrf.mxu1 }
 0x309   :  { %v716_v52 = vpop.f32.mrf.mxu3 }
 0x30a   :  { %v644_v53 = vadd.f32 %v643_v44, %v619_v51  ;;  %v717_v55 = vadd.f32 %v716_v52, %v675_v50 }
 0x30c   :  { %646 = vst [vmem:[%s5696_s8] sm:$0xff] %v644_v53 }
 0x30f   :  { %v746_v56 = vpop.f32.mrf.mxu0  ;;  %v806_v59 = vpop.f32.mrf.mxu2 }
 0x310   :  { %v747_v57 = vadd.f32 %v746_v56, %v717_v55  ;;  %v892_v19 = vpop.f32.mrf.mxu1 }
 0x311   :  { %v831_v61 = vpop.f32.mrf.mxu3 }
 0x312   :  { %v774_v60 = vadd.f32 %v773_v54, %v747_v57 }
 0x314   :  { %v807_v7 = vadd.f32 %v806_v59, %v774_v60 }
 0x316   :  { %v832_v26 = vadd.f32 %v831_v61, %v807_v7 }
 0x317   :  { %v861_v28 = vpop.f32.mrf.mxu0  ;;  %v918_v38 = vpop.f32.mrf.mxu2 }
 0x318   :  { %v862_v31 = vadd.f32 %v861_v28, %v832_v26  ;;  %v993_v8 = vpop.f32.mrf.mxu1 }
 0x319   :  { %v943_v48 = vpop.f32.mrf.mxu3 }
 0x31a   :  { %v893_v47 = vadd.f32 %v892_v19, %v862_v31 }
 0x31c   :  { %v919_v44 = vadd.f32 %v918_v38, %v893_v47 }
 0x31e   :  { %v944_v49 = vadd.f32 %v943_v48, %v919_v44 }
 0x31f   :  { %v970_v51 = vpop.f32.mrf.mxu0 }
 0x320   :  { %v971_v53 = vadd.f32 %v970_v51, %v944_v49 }
 0x322   :  { %v994_v40 = vadd.f32 %v993_v8, %v971_v53 }
 0x324   :  { %v996_v50 = vadd.f32 %v5018_v27, %v994_v40 }
 0x326   :  { %4753 = vtanh.f32 %v996_v50  ;;  %v997_v54 = vsub.f32 0.0, %v996_v50 }
 0x328   :  { %v998_v55 = vmul.f32 1.442695, %v997_v54 }
 0x32a   :  { %4755 = vpow2.f32 %v998_v55 }
 0x32c   :  { %v4754_v52 = vpop.eup %4753 }
 0x32d   :  { %1019 = vrot.lane.b32.xlu2 %v4754_v52, %s4812_s29 }
 0x330   :  { %v4756_v56 = vpop.eup %4755 }
 0x331   :  { %v1000_v57 = vadd.f32 1.0, %v4756_v56 }
 0x333   :  { %4757 = vrcp.f32 %v1000_v57  ;;  %v1012_v26 = vand.u32 2147483648, %v1000_v57  ;;  %vm1006_vm7 = vweird.f32 %v1000_v57  ;;  %v1010_v8 = vand.u32 2147483647, %v1000_v57 }
 0x335   :  { %v1013_v28 = vor.u32 1.1754944e-38, %v1012_v26  ;;  %vm1011_vm9 = vcmp.eq.f32.partialorder %v1010_v8, 8.507059e+37 }
 0x339   :  { %v4758_v59 = vpop.eup %4757 }
 0x33a   :  { %v1002_v60 = vmul.f32 %v4758_v59, %v1000_v57  ;;  %vm1007_vm6 = vweird.f32 %v4758_v59 }
 0x33b   :  { %vm1008_vm8 = vmor %vm1006_vm7, %vm1007_vm6 }
 0x33c   :  { %v1003_v61 = vsub.f32 1.0, %v1002_v60  ;;  %v4728_v60 = vld [vmem:[%s5691_s0 + $0x10] sm:$0xff] }
 0x33e   :  { %v1004_v7 = vmul.f32 %v4758_v59, %v1003_v61  ;;  %v1414_v61 = vsel %vm251_vm1, %v4728_v60, 0 }
 0x340   :  { %v1005_v19 = vadd.f32 %v4758_v59, %v1004_v7  ;;  %v1434_v7 = vand.u32 4294901760, %v1414_v61 }
 0x342   :  { %v1009_v40 = vsel %vm1008_vm8, %v4758_v59, %v1005_v19  ;;  %v1435_v19 = vsub.f32 %v1414_v61, %v1434_v7 }
 0x343   :  { %v1014_v38 = vsel %vm1011_vm9, %v1013_v28, %v1009_v40  ;;  %v5708_v28 = vld [vmem:[#allocation4_spill] sm:$0xff] }
 0x344   :  { %v1017_v48 = vmul.f32 %v1014_v38, %v5024_v58  ;;  %v1436_v26 = vand.u32 4294901760, %v1435_v19 }
 0x346   :  { %v1437_v8 = vsub.f32 %v1435_v19, %v1436_v26 }
 0x348   :  { %v1438_v40 = vand.u32 4294901760, %v1437_v8 }
 0x387   :  { %v1020_v31 = vpop.permute.xlu2 %1019 }
 0x388   :  { %v1022_v47 = vmul.f32 %v1020_v31, %v1014_v38 }
 0x38a   :  { %1024 = vrot.lane.b32.xlu0 %v1022_v47, %s4813_s30 }
 0x3fc   :  { %v1025_v44 = vpop.permute.xlu0 %1024 }
 0x3fd   :  { %v5199_v49 = vadd.f32 %v1025_v44, %v1017_v48  ;;  %v5709_v44 = vld [vmem:[#allocation5_spill] sm:$0xff] }
 0x3ff   :  { %4759 = vtanh.f32 %v5199_v49 }
 0x405   :  { %v4760_v51 = vpop.eup %4759 }
 0x406   :  { %1030 = vrot.lane.b32.xlu1 %v4760_v51, %s4812_s29 }
 0x478   :  { %v1031_v53 = vpop.permute.xlu1 %1030 }
 0x479   :  { %v1033_v50 = vmul.f32 %v1031_v53, %v1014_v38 }
 0x47b   :  { %1035 = vrot.lane.b32.xlu2 %v1033_v50, %s4813_s30 }
 0x4d5   :  { %v1036_v52 = vpop.permute.xlu2 %1035 }
 0x4d6   :  { %v1037_v54 = vsel %vm37_vm0, %v1036_v52, 0 }
 0x4d7   :  { %v1059_v55 = vand.u32 4294901760, %v1037_v54 }
 0x4d9   :  { %v1060_v56 = vsub.f32 %v1037_v54, %v1059_v55  ;;  %1105 = vmatmul.f32.vlgmr.msrb.gmra.mxu3 %v1059_v55 }
 0x4da   :  { %1341 = vmatpush.msrb.mxu3 %v4879_v3 }
 0x4db   :  { %1135 = vmatmul.f32.vlgmr.msra.gmra.mxu0 %v1060_v56  ;;  %v1061_v58 = vand.u32 4294901760, %v1060_v56 }
 0x4dc   :  { %1343 = vmatpush.msrb.mxu3 %v4881_v4  ;;  %1370 = vmatpush.msra.mxu0 %v4927_v20 }
 0x4dd   :  { %1162 = vmatmul.f32.vlgmr.msra.gmra.mxu1 %v1061_v58  ;;  %v1062_v57 = vsub.f32 %v1060_v56, %v1061_v58 }
 0x4de   :  { %1345 = vmatpush.msrb.mxu3 %v4883_v5  ;;  %1374 = vmatpush.msra.mxu0 %v4931_v21 }
 0x4df   :  { %v1063_v59 = vand.u32 4294901760, %v1062_v57  ;;  %1401 = vmatpush.msra.mxu1 %v4879_v3 }
 0x4e0   :  { %1347 = vmatpush.msrb.mxu3 %v4894_v9  ;;  %1378 = vmatpush.msra.mxu0 %v4934_v22 }
 0x4e1   :  { %1064 = vmatmul.f32.vlgmr.msrb.gmra.mxu2 %v1063_v59  ;;  %1220 = vmatmul.f32.vlgmr.msra.gmra.mxu3 %v1059_v55 }
 0x4e2   :  { %1403 = vmatpush.msra.mxu1 %v4881_v4  ;;  %1312 = vmatpush.msrb.mxu2 %v4906_v13 }
 0x4e3   :  { %1253 = vmatmul.f32.vlgmr.msrb.gmra.mxu0 %v1063_v59  ;;  %1462 = vmatpush.msra.mxu3 %v4975_v39 }
 0x4e4   :  { %1382 = vmatpush.msra.mxu0 %v4941_v24  ;;  %1405 = vmatpush.msra.mxu1 %v4883_v5 }
 0x4e5   :  { %1294 = vmatmul.f32.vlgmr.msrb.gmra.mxu1 %v1059_v55  ;;  %1315 = vmatpush.msrb.mxu2 %v4909_v14 }
 0x4e6   :  { %1407 = vmatpush.msra.mxu1 %v4894_v9  ;;  %1468 = vmatpush.msra.mxu3 %v4983_v43 }
 0x4e7   :  { %1318 = vmatpush.msrb.mxu2 %v4914_v15  ;;  %1490 = vmatpush.msrb.mxu0 %v4922_v18 }
 0x4e8   :  { %1515 = vmatpush.msrb.mxu1 %v4897_v10 }
 0x4e9   :  { %1195 = vmatmul.f32.vlgmr.msra.gmra.mxu2 %v1059_v55  ;;  %1351 = vmatmul.f32.vlgmr.msrb.gmra.mxu3 %v1061_v58 }
 0x4ea   :  { %1321 = vmatpush.msrb.mxu2 %v4919_v17  ;;  %1567 = vmatpush.msrb.mxu3 %v4897_v10 }
 0x4eb   :  { %1384 = vmatmul.f32.vlgmr.msra.gmra.mxu0 %v1059_v55  ;;  %1517 = vmatpush.msrb.mxu1 %v4916_v16 }
 0x4ec   :  { %1431 = vmatpush.msra.mxu2 %v4897_v10  ;;  %1493 = vmatpush.msrb.mxu0 %v4937_v23 }
 0x4ed   :  { %1569 = vmatpush.msrb.mxu3 %v4916_v16  ;;  %1409 = vmatmul.f32.vlgmr.msra.gmra.mxu1 %v1059_v55 }
 0x4ee   :  { %1433 = vmatpush.msra.mxu2 %v4916_v16  ;;  %1631 = vmatpush.msra.mxu0 %v5034_v62 }
 0x4ef   :  { %1664 = vmatpush.msra.mxu1 %v5060_v11 }
 0x4f0   :  { %1633 = vmatpush.msra.mxu0 %v5036_v63 }
 0x4f1   :  { %1324 = vmatmul.f32.vlgmr.msrb.gmra.mxu2 %v1060_v56  ;;  %1470 = vmatmul.f32.vlgmr.msra.gmra.mxu3 %v1434_v7 }
 0x4f2   :  { %1542 = vmatpush.msrb.mxu2 %v4944_v25  ;;  %1670 = vmatpush.msra.mxu1 %v5062_v12 }
 0x4f3   :  { %1496 = vmatmul.f32.vlgmr.msrb.gmra.mxu0 %v1435_v19  ;;  %1731 = vmatpush.msra.mxu3 %v5034_v62 }
 0x4f4   :  { %1546 = vmatpush.msrb.mxu2 %v4957_v30  ;;  %1676 = vmatpush.msra.mxu1 %v5101_v42 }
 0x4f5   :  { %1521 = vmatmul.f32.vlgmr.msrb.gmra.mxu1 %v1436_v26  ;;  %1733 = vmatpush.msra.mxu3 %v5036_v63 }
 0x4f6   :  { %1682 = vmatpush.msra.mxu1 %v5109_v46  ;;  %1635 = vmatpush.msra.mxu0 %v5070_v29 }
 0x4f7   :  { %1735 = vmatpush.msra.mxu3 %v5070_v29 }
 0x4f8   :  { %1791 = vmatpush.msrb.mxu1 %v5034_v62  ;;  %1637 = vmatpush.msra.mxu0 %v5078_v35 }
 0x4f9   :  { %1439 = vmatmul.f32.vlgmr.msra.gmra.mxu2 %v1438_v40  ;;  %1571 = vmatmul.f32.vlgmr.msrb.gmra.mxu3 %v1434_v7 }
 0x4fa   :  { %1702 = vmatpush.msra.mxu2 %v5039_v0  ;;  %1737 = vmatpush.msra.mxu3 %v5078_v35 }
 0x4fb   :  { %1793 = vmatpush.msrb.mxu1 %v5036_v63  ;;  %1760 = vmatpush.msrb.mxu0 %v5047_v2 }
 0x4fc   :  { %1853 = vmatpush.msrb.mxu3 %v4963_v33  ;;  %1705 = vmatpush.msra.mxu2 %v5042_v1 }
 0x4fd   :  { %1795 = vmatpush.msrb.mxu1 %v5070_v29  ;;  %1764 = vmatpush.msrb.mxu0 %v5050_v6 }
 0x4fe   :  { %1859 = vmatpush.msrb.mxu3 %v4966_v34  ;;  %1708 = vmatpush.msra.mxu2 %v5076_v32 }
 0x4ff   :  { %1797 = vmatpush.msrb.mxu1 %v5078_v35  ;;  %1768 = vmatpush.msrb.mxu0 %v5083_v36 }
 0x500   :  { %1865 = vmatpush.msrb.mxu3 %v4979_v41  ;;  %1711 = vmatpush.msra.mxu2 %v5086_v37 }
 0x501   :  { %1548 = vmatmul.f32.vlgmr.msrb.gmra.mxu2 %v1434_v7  ;;  %1772 = vmatpush.msrb.mxu0 %v5708_v28 }
 0x502   :  { %1871 = vmatpush.msrb.mxu3 %v4986_v45  ;;  %1820 = vmatpush.msrb.mxu2 %v4879_v3 }
 0x504   :  { %1822 = vmatpush.msrb.mxu2 %v4881_v4 }
 0x506   :  { %1824 = vmatpush.msrb.mxu2 %v4883_v5 }
 0x508   :  { %1826 = vmatpush.msrb.mxu2 %v4894_v9 }
 0x558   :  { %v1136_v38 = vpop.f32.mrf.mxu0 }
 0x55a   :  { %v1163_v47 = vpop.f32.mrf.mxu1 }
 0x55c   :  { %v1106_v31 = vpop.f32.mrf.mxu3 }
 0x560   :  { %v1254_v55 = vpop.f32.mrf.mxu0 }
 0x562   :  { %v1295_v57 = vpop.f32.mrf.mxu1 }
 0x563   :  { %v1296_v61 = vadd.f32 %v1295_v57, %v1254_v55 }
 0x564   :  { %v1065_v48 = vpop.f32.mrf.mxu2  ;;  %v1221_v50 = vpop.f32.mrf.mxu3 }
 0x565   :  { %v1066_v51 = vadd.f32 %v5709_v44, %v1065_v48 }
 0x567   :  { %v1107_v53 = vadd.f32 %v1106_v31, %v1066_v51 }
 0x568   :  { %v1385_v26 = vpop.f32.mrf.mxu0 }
 0x569   :  { %v1137_v52 = vadd.f32 %v1136_v38, %v1107_v53 }
 0x56a   :  { %v1410_v40 = vpop.f32.mrf.mxu1 }
 0x56b   :  { %v1164_v54 = vadd.f32 %v1163_v47, %v1137_v52 }
 0x56c   :  { %v1196_v56 = vpop.f32.mrf.mxu2  ;;  %v1352_v60 = vpop.f32.mrf.mxu3 }
 0x56d   :  { %v1197_v58 = vadd.f32 %v1196_v56, %v1164_v54 }
 0x56f   :  { %v1222_v59 = vadd.f32 %v1221_v50, %v1197_v58 }
 0x570   :  { %v1497_v53 = vpop.f32.mrf.mxu0 }
 0x571   :  { %4727 = vst [vmem:[%s5696_s8 + $0x8] sm:$0xff] %v1222_v59 }
 0x572   :  { %v1522_v54 = vpop.f32.mrf.mxu1 }
 0x574   :  { %v1325_v7 = vpop.f32.mrf.mxu2  ;;  %v1471_v48 = vpop.f32.mrf.mxu3 }
 0x575   :  { %v1326_v19 = vadd.f32 %v1325_v7, %v1296_v61 }
 0x577   :  { %v1353_v8 = vadd.f32 %v1352_v60, %v1326_v19 }
 0x579   :  { %v1386_v31 = vadd.f32 %v1385_v26, %v1353_v8 }
 0x57b   :  { %v1411_v38 = vadd.f32 %v1410_v40, %v1386_v31 }
 0x57c   :  { %v1440_v47 = vpop.f32.mrf.mxu2  ;;  %v1572_v44 = vpop.f32.mrf.mxu3 }
 0x57d   :  { %v1441_v51 = vadd.f32 %v1440_v47, %v1411_v38 }
 0x57f   :  { %v1472_v52 = vadd.f32 %v1471_v48, %v1441_v51 }
 0x581   :  { %v1498_v50 = vadd.f32 %v1497_v53, %v1472_v52 }
 0x583   :  { %v1523_v56 = vadd.f32 %v1522_v54, %v1498_v50 }
 0x584   :  { %v1549_v58 = vpop.f32.mrf.mxu2 }
 0x585   :  { %v1550_v59 = vadd.f32 %v1549_v58, %v1523_v56 }
 0x587   :  { %v1573_v28 = vadd.f32 %v1572_v44, %v1550_v59 }
 0x589   :  { %v1575_v55 = vadd.f32 %v5018_v27, %v1573_v28 }
 0x58b   :  { %4761 = vtanh.f32 %v1575_v55  ;;  %v1576_v60 = vsub.f32 0.0, %v1575_v55 }
 0x58d   :  { %v1577_v61 = vmul.f32 1.442695, %v1576_v60 }
 0x58f   :  { %4763 = vpow2.f32 %v1577_v61 }
 0x591   :  { %v4762_v57 = vpop.eup %4761 }
 0x592   :  { %1598 = vrot.lane.b32.xlu0 %v4762_v57, %s4812_s29 }
 0x595   :  { %v4764_v7 = vpop.eup %4763 }
 0x596   :  { %v1579_v19 = vadd.f32 1.0, %v4764_v7 }
 0x598   :  { %4765 = vrcp.f32 %v1579_v19  ;;  %v1591_v38 = vand.u32 2147483648, %v1579_v19  ;;  %vm1585_vm11 = vweird.f32 %v1579_v19  ;;  %v1589_v44 = vand.u32 2147483647, %v1579_v19 }
 0x59a   :  { %v1592_v28 = vor.u32 1.1754944e-38, %v1591_v38  ;;  %vm1590_vm13 = vcmp.eq.f32.partialorder %v1589_v44, 8.507059e+37 }
 0x59e   :  { %v4766_v26 = vpop.eup %4765 }
 0x59f   :  { %v1581_v8 = vmul.f32 %v4766_v26, %v1579_v19  ;;  %vm1586_vm10 = vweird.f32 %v4766_v26 }
 0x5a0   :  { %vm1587_vm12 = vmor %vm1585_vm11, %vm1586_vm10 }
 0x5a1   :  { %v1582_v40 = vsub.f32 1.0, %v1581_v8 }
 0x5a3   :  { %v1583_v31 = vmul.f32 %v4766_v26, %v1582_v40 }
 0x5a5   :  { %v1584_v48 = vadd.f32 %v4766_v26, %v1583_v31 }
 0x5a7   :  { %v1588_v27 = vsel %vm1587_vm12, %v4766_v26, %v1584_v48  ;;  %v4730_v26 = vld [vmem:[%s5691_s0 + $0x18] sm:$0xff] }
 0x5a8   :  { %v1593_v51 = vsel %vm1590_vm13, %v1592_v28, %v1588_v27  ;;  %v1993_v8 = vsel %vm251_vm1, %v4730_v26, 0  ;;  %v5710_v27 = vld [vmem:[#allocation4_spill] sm:$0xff] }
 0x5a9   :  { %v1596_v52 = vmul.f32 %v1593_v51, %v5199_v49  ;;  %v2013_v40 = vand.u32 4294901760, %v1993_v8 }
 0x5ab   :  { %v2014_v31 = vsub.f32 %v1993_v8, %v2013_v40 }
 0x5ad   :  { %v2015_v48 = vand.u32 4294901760, %v2014_v31 }
 0x5af   :  { %v2016_v38 = vsub.f32 %v2014_v31, %v2015_v48 }
 0x5b1   :  { %v2017_v44 = vand.u32 4294901760, %v2016_v38 }
 0x604   :  { %v1599_v47 = vpop.permute.xlu0 %1598 }
 0x605   :  { %v1601_v53 = vmul.f32 %v1599_v47, %v1593_v51 }
 0x607   :  { %1603 = vrot.lane.b32.xlu1 %v1601_v53, %s4813_s30  ;;  %v5711_v53 = vld [vmem:[#allocation5_spill] sm:$0xff] }
 0x679   :  { %v1604_v54 = vpop.permute.xlu1 %1603 }
 0x67a   :  { %v5277_v50 = vadd.f32 %v1604_v54, %v1596_v52 }
 0x67c   :  { %4767 = vtanh.f32 %v5277_v50 }
 0x682   :  { %v4768_v56 = vpop.eup %4767 }
 0x683   :  { %1609 = vrot.lane.b32.xlu2 %v4768_v56, %s4812_s29 }
 0x6dd   :  { %v1610_v58 = vpop.permute.xlu2 %1609 }
 0x6de   :  { %v1612_v59 = vmul.f32 %v1610_v58, %v1593_v51 }
 0x6e0   :  { %1614 = vrot.lane.b32.xlu0 %v1612_v59, %s4813_s30 }
 0x752   :  { %v1615_v55 = vpop.permute.xlu0 %1614 }
 0x753   :  { %v1616_v57 = vsel %vm37_vm0, %v1615_v55, 0 }
 0x754   :  { %v1638_v60 = vand.u32 4294901760, %v1616_v57 }
 0x756   :  { %v1639_v61 = vsub.f32 %v1616_v57, %v1638_v60  ;;  %1684 = vmatmul.f32.vlgmr.msra.gmra.mxu1 %v1638_v60 }
 0x757   :  { %1920 = vmatpush.msra.mxu1 %v4879_v3 }
 0x758   :  { %1714 = vmatmul.f32.vlgmr.msra.gmra.mxu2 %v1639_v61  ;;  %v1640_v49 = vand.u32 4294901760, %v1639_v61 }
 0x759   :  { %1922 = vmatpush.msra.mxu1 %v4881_v4  ;;  %1949 = vmatpush.msra.mxu2 %v4927_v20 }
 0x75a   :  { %1741 = vmatmul.f32.vlgmr.msra.gmra.mxu3 %v1640_v49  ;;  %v1641_v7 = vsub.f32 %v1639_v61, %v1640_v49 }
 0x75b   :  { %1924 = vmatpush.msra.mxu1 %v4883_v5  ;;  %1953 = vmatpush.msra.mxu2 %v4931_v21 }
 0x75c   :  { %v1642_v19 = vand.u32 4294901760, %v1641_v7  ;;  %1980 = vmatpush.msra.mxu3 %v4879_v3 }
 0x75d   :  { %1926 = vmatpush.msra.mxu1 %v4894_v9  ;;  %1957 = vmatpush.msra.mxu2 %v4934_v22 }
 0x75e   :  { %1643 = vmatmul.f32.vlgmr.msra.gmra.mxu0 %v1642_v19  ;;  %1799 = vmatmul.f32.vlgmr.msrb.gmra.mxu1 %v1638_v60 }
 0x75f   :  { %1982 = vmatpush.msra.mxu3 %v4881_v4  ;;  %1891 = vmatpush.msra.mxu0 %v4906_v13 }
 0x760   :  { %1832 = vmatmul.f32.vlgmr.msrb.gmra.mxu2 %v1642_v19  ;;  %2041 = vmatpush.msrb.mxu1 %v4975_v39 }
 0x761   :  { %1961 = vmatpush.msra.mxu2 %v4941_v24  ;;  %1984 = vmatpush.msra.mxu3 %v4883_v5 }
 0x762   :  { %1873 = vmatmul.f32.vlgmr.msrb.gmra.mxu3 %v1638_v60  ;;  %1894 = vmatpush.msra.mxu0 %v4909_v14 }
 0x763   :  { %1986 = vmatpush.msra.mxu3 %v4894_v9  ;;  %2069 = vmatpush.msrb.mxu2 %v4922_v18 }
 0x764   :  { %1897 = vmatpush.msra.mxu0 %v4914_v15  ;;  %2047 = vmatpush.msrb.mxu1 %v4983_v43 }
 0x765   :  { %2094 = vmatpush.msrb.mxu3 %v4897_v10  ;;  %2072 = vmatpush.msrb.mxu2 %v4937_v23 }
 0x766   :  { %1774 = vmatmul.f32.vlgmr.msrb.gmra.mxu0 %v1638_v60  ;;  %1930 = vmatmul.f32.vlgmr.msra.gmra.mxu1 %v1640_v49 }
 0x767   :  { %1900 = vmatpush.msra.mxu0 %v4919_v17  ;;  %2096 = vmatpush.msrb.mxu3 %v4916_v16 }
 0x768   :  { %1963 = vmatmul.f32.vlgmr.msra.gmra.mxu2 %v1638_v60  ;;  %2146 = vmatpush.msra.mxu1 %v4897_v10 }
 0x769   :  { %2010 = vmatpush.msrb.mxu0 %v4897_v10  ;;  %2210 = vmatpush.msra.mxu2 %v5034_v62 }
 0x76a   :  { %1988 = vmatmul.f32.vlgmr.msra.gmra.mxu3 %v1638_v60  ;;  %2148 = vmatpush.msra.mxu1 %v4916_v16 }
 0x76b   :  { %2012 = vmatpush.msrb.mxu0 %v4916_v16  ;;  %2243 = vmatpush.msra.mxu3 %v5060_v11 }
 0x76c   :  { %2212 = vmatpush.msra.mxu2 %v5036_v63 }
 0x76d   :  { %2249 = vmatpush.msra.mxu3 %v5062_v12 }
 0x76e   :  { %1903 = vmatmul.f32.vlgmr.msra.gmra.mxu0 %v1639_v61  ;;  %2049 = vmatmul.f32.vlgmr.msrb.gmra.mxu1 %v2013_v40 }
 0x76f   :  { %2121 = vmatpush.msra.mxu0 %v4944_v25  ;;  %2255 = vmatpush.msra.mxu3 %v5101_v42 }
 0x770   :  { %2075 = vmatmul.f32.vlgmr.msrb.gmra.mxu2 %v2014_v31  ;;  %2310 = vmatpush.msrb.mxu1 %v5034_v62 }
 0x771   :  { %2125 = vmatpush.msra.mxu0 %v4957_v30  ;;  %2261 = vmatpush.msra.mxu3 %v5109_v46 }
 0x772   :  { %2100 = vmatmul.f32.vlgmr.msrb.gmra.mxu3 %v2015_v48  ;;  %2312 = vmatpush.msrb.mxu1 %v5036_v63 }
 0x773   :  { %2370 = vmatpush.msrb.mxu3 %v5034_v62  ;;  %2214 = vmatpush.msra.mxu2 %v5070_v29 }
 0x774   :  { %2314 = vmatpush.msrb.mxu1 %v5070_v29 }
 0x775   :  { %2372 = vmatpush.msrb.mxu3 %v5036_v63  ;;  %2216 = vmatpush.msra.mxu2 %v5078_v35 }
 0x776   :  { %2018 = vmatmul.f32.vlgmr.msrb.gmra.mxu0 %v2017_v44  ;;  %2150 = vmatmul.f32.vlgmr.msra.gmra.mxu1 %v2013_v40 }
 0x777   :  { %2281 = vmatpush.msrb.mxu0 %v5039_v0  ;;  %2316 = vmatpush.msrb.mxu1 %v5078_v35 }
 0x778   :  { %2374 = vmatpush.msrb.mxu3 %v5070_v29  ;;  %2339 = vmatpush.msrb.mxu2 %v5047_v2 }
 0x779   :  { %2432 = vmatpush.msra.mxu1 %v4963_v33  ;;  %2284 = vmatpush.msrb.mxu0 %v5042_v1 }
 0x77a   :  { %2376 = vmatpush.msrb.mxu3 %v5078_v35  ;;  %2343 = vmatpush.msrb.mxu2 %v5050_v6 }
 0x77b   :  { %2438 = vmatpush.msra.mxu1 %v4966_v34  ;;  %2287 = vmatpush.msrb.mxu0 %v5076_v32 }
 0x77c   :  { %2347 = vmatpush.msrb.mxu2 %v5083_v36 }
 0x77d   :  { %2444 = vmatpush.msra.mxu1 %v4979_v41  ;;  %2290 = vmatpush.msrb.mxu0 %v5086_v37 }
 0x77e   :  { %2127 = vmatmul.f32.vlgmr.msra.gmra.mxu0 %v2013_v40  ;;  %2351 = vmatpush.msrb.mxu2 %v5710_v27 }
 0x77f   :  { %2450 = vmatpush.msra.mxu1 %v4986_v45  ;;  %2399 = vmatpush.msra.mxu0 %v4879_v3 }
 0x781   :  { %2401 = vmatpush.msra.mxu0 %v4881_v4 }
 0x783   :  { %2403 = vmatpush.msra.mxu0 %v4883_v5 }
 0x785   :  { %2405 = vmatpush.msra.mxu0 %v4894_v9 }
 0x7d3   :  { %v1685_v28 = vpop.f32.mrf.mxu1 }
 0x7db   :  { %v1644_v47 = vpop.f32.mrf.mxu0  ;;  %v1715_v51 = vpop.f32.mrf.mxu2 }
 0x7dc   :  { %v1645_v52 = vadd.f32 %v5711_v53, %v1644_v47  ;;  %v1800_v58 = vpop.f32.mrf.mxu1 }
 0x7dd   :  { %v1742_v54 = vpop.f32.mrf.mxu3 }
 0x7de   :  { %v1686_v56 = vadd.f32 %v1685_v28, %v1645_v52 }
 0x7e0   :  { %v1716_v59 = vadd.f32 %v1715_v51, %v1686_v56 }
 0x7e2   :  { %v1743_v55 = vadd.f32 %v1742_v54, %v1716_v59 }
 0x7e3   :  { %v1775_v57 = vpop.f32.mrf.mxu0  ;;  %v1833_v60 = vpop.f32.mrf.mxu2 }
 0x7e4   :  { %v1776_v61 = vadd.f32 %v1775_v57, %v1743_v55  ;;  %v1931_v19 = vpop.f32.mrf.mxu1 }
 0x7e5   :  { %v1874_v49 = vpop.f32.mrf.mxu3 }
 0x7e6   :  { %v1801_v7 = vadd.f32 %v1800_v58, %v1776_v61  ;;  %v1875_v26 = vadd.f32 %v1874_v49, %v1833_v60  ;;  %v5354_v60 = vld [vmem:[%s5692_s2] ss:$0 sm:$0xff] }
 0x7e8   :  { %4729 = vst [vmem:[%s5696_s8 + $0x10] sm:$0xff] %v1801_v7 }
 0x7eb   :  { %v1904_v8 = vpop.f32.mrf.mxu0  ;;  %v1964_v31 = vpop.f32.mrf.mxu2 }
 0x7ec   :  { %v1905_v40 = vadd.f32 %v1904_v8, %v1875_v26  ;;  %v2050_v28 = vpop.f32.mrf.mxu1 }
 0x7ed   :  { %v1989_v38 = vpop.f32.mrf.mxu3 }
 0x7ee   :  { %v1932_v48 = vadd.f32 %v1931_v19, %v1905_v40 }
 0x7f0   :  { %v1965_v44 = vadd.f32 %v1964_v31, %v1932_v48 }
 0x7f2   :  { %v1990_v47 = vadd.f32 %v1989_v38, %v1965_v44 }
 0x7f3   :  { %v2019_v51 = vpop.f32.mrf.mxu0  ;;  %v2076_v54 = vpop.f32.mrf.mxu2 }
 0x7f4   :  { %v2020_v52 = vadd.f32 %v2019_v51, %v1990_v47  ;;  %v2151_v61 = vpop.f32.mrf.mxu1 }
 0x7f5   :  { %v2101_v59 = vpop.f32.mrf.mxu3 }
 0x7f6   :  { %v2051_v56 = vadd.f32 %v2050_v28, %v2020_v52 }
 0x7f8   :  { %v2077_v58 = vadd.f32 %v2076_v54, %v2051_v56 }
 0x7fa   :  { %v2102_v55 = vadd.f32 %v2101_v59, %v2077_v58 }
 0x7fb   :  { %v2128_v57 = vpop.f32.mrf.mxu0 }
 0x7fc   :  { %v2129_v7 = vadd.f32 %v2128_v57, %v2102_v55 }
 0x7fe   :  { %v2152_v53 = vadd.f32 %v2151_v61, %v2129_v7 }
 0x800   :  { %v2154_v49 = vadd.f32 %v5354_v60, %v2152_v53 }
 0x802   :  { %4769 = vtanh.f32 %v2154_v49  ;;  %v2155_v26 = vsub.f32 0.0, %v2154_v49 }
 0x804   :  { %v2156_v8 = vmul.f32 1.442695, %v2155_v26 }
 0x806   :  { %4771 = vpow2.f32 %v2156_v8 }
 0x808   :  { %v4770_v19 = vpop.eup %4769 }
 0x809   :  { %2177 = vrot.lane.b32.xlu1 %v4770_v19, %s4812_s29 }
 0x80c   :  { %v4772_v40 = vpop.eup %4771 }
 0x80d   :  { %v2158_v31 = vadd.f32 1.0, %v4772_v40 }
 0x80f   :  { %4773 = vrcp.f32 %v2158_v31  ;;  %v2170_v51 = vand.u32 2147483648, %v2158_v31  ;;  %vm2164_vm15 = vweird.f32 %v2158_v31  ;;  %v2168_v52 = vand.u32 2147483647, %v2158_v31 }
 0x811   :  { %v2171_v54 = vor.u32 1.1754944e-38, %v2170_v51  ;;  %vm2169_vm3 = vcmp.eq.f32.partialorder %v2168_v52, 8.507059e+37 }
 0x815   :  { %v4774_v48 = vpop.eup %4773 }
 0x816   :  { %v2160_v38 = vmul.f32 %v4774_v48, %v2158_v31  ;;  %vm2165_vm14 = vweird.f32 %v4774_v48 }
 0x817   :  { %vm2166_vm2 = vmor %vm2164_vm15, %vm2165_vm14 }
 0x818   :  { %v2161_v44 = vsub.f32 1.0, %v2160_v38 }
 0x81a   :  { %v2162_v28 = vmul.f32 %v4774_v48, %v2161_v44  ;;  %v4732_v44 = vld [vmem:[%s5691_s0 + $0x20] sm:$0xff] }
 0x81c   :  { %v2163_v47 = vadd.f32 %v4774_v48, %v2162_v28  ;;  %v2572_v28 = vsel %vm251_vm1, %v4732_v44, 0 }
 0x81e   :  { %v2167_v53 = vsel %vm2166_vm2, %v4774_v48, %v2163_v47  ;;  %v2592_v47 = vand.u32 4294901760, %v2572_v28 }
 0x81f   :  { %v2172_v59 = vsel %vm2169_vm3, %v2171_v54, %v2167_v53 }
 0x820   :  { %v2175_v55 = vmul.f32 %v2172_v59, %v5277_v50  ;;  %v2593_v51 = vsub.f32 %v2572_v28, %v2592_v47 }
 0x822   :  { %v2594_v52 = vand.u32 4294901760, %v2593_v51 }
 0x824   :  { %v2595_v53 = vsub.f32 %v2593_v51, %v2594_v52 }
 0x826   :  { %v2596_v54 = vand.u32 4294901760, %v2595_v53 }
 0x87b   :  { %v2178_v56 = vpop.permute.xlu1 %2177 }
 0x87c   :  { %v2180_v58 = vmul.f32 %v2178_v56, %v2172_v59 }
 0x87e   :  { %2182 = vrot.lane.b32.xlu2 %v2180_v58, %s4813_s30 }
 0x8d8   :  { %v2183_v57 = vpop.permute.xlu2 %2182 }
 0x8d9   :  { %v5360_v61 = vadd.f32 %v2183_v57, %v2175_v55  ;;  %v5712_v57 = vld [vmem:[#allocation5_spill] sm:$0xff] }
 0x8db   :  { %4775 = vtanh.f32 %v5360_v61 }
 0x8e1   :  { %v4776_v7 = vpop.eup %4775 }
 0x8e2   :  { %2188 = vrot.lane.b32.xlu0 %v4776_v7, %s4812_s29 }
 0x954   :  { %v2189_v49 = vpop.permute.xlu0 %2188 }
 0x955   :  { %v2191_v19 = vmul.f32 %v2189_v49, %v2172_v59 }
 0x957   :  { %2193 = vrot.lane.b32.xlu1 %v2191_v19, %s4813_s30 }
 0x9c9   :  { %v2194_v26 = vpop.permute.xlu1 %2193 }
 0x9ca   :  { %v2195_v8 = vsel %vm37_vm0, %v2194_v26, 0 }
 0x9cb   :  { %v2217_v40 = vand.u32 4294901760, %v2195_v8 }
 0x9cd   :  { %v2218_v31 = vsub.f32 %v2195_v8, %v2217_v40  ;;  %2263 = vmatmul.f32.vlgmr.msra.gmra.mxu3 %v2217_v40 }
 0x9ce   :  { %2499 = vmatpush.msra.mxu3 %v4879_v3 }
 0x9cf   :  { %2293 = vmatmul.f32.vlgmr.msrb.gmra.mxu0 %v2218_v31  ;;  %v2219_v50 = vand.u32 4294901760, %v2218_v31 }
 0x9d0   :  { %2501 = vmatpush.msra.mxu3 %v4881_v4  ;;  %2528 = vmatpush.msrb.mxu0 %v4927_v20 }
 0x9d1   :  { %2320 = vmatmul.f32.vlgmr.msrb.gmra.mxu1 %v2219_v50  ;;  %v2220_v48 = vsub.f32 %v2218_v31, %v2219_v50 }
 0x9d2   :  { %2503 = vmatpush.msra.mxu3 %v4883_v5  ;;  %2532 = vmatpush.msrb.mxu0 %v4931_v21 }
 0x9d3   :  { %v2221_v38 = vand.u32 4294901760, %v2220_v48  ;;  %2559 = vmatpush.msrb.mxu1 %v4879_v3 }
 0x9d4   :  { %2505 = vmatpush.msra.mxu3 %v4894_v9  ;;  %2536 = vmatpush.msrb.mxu0 %v4934_v22 }
 0x9d5   :  { %2222 = vmatmul.f32.vlgmr.msra.gmra.mxu2 %v2221_v38  ;;  %2378 = vmatmul.f32.vlgmr.msrb.gmra.mxu3 %v2217_v40 }
 0x9d6   :  { %2561 = vmatpush.msrb.mxu1 %v4881_v4  ;;  %2470 = vmatpush.msra.mxu2 %v4906_v13 }
 0x9d7   :  { %2411 = vmatmul.f32.vlgmr.msra.gmra.mxu0 %v2221_v38  ;;  %2620 = vmatpush.msrb.mxu3 %v4975_v39 }
 0x9d8   :  { %2540 = vmatpush.msrb.mxu0 %v4941_v24  ;;  %2563 = vmatpush.msrb.mxu1 %v4883_v5 }
 0x9d9   :  { %2452 = vmatmul.f32.vlgmr.msra.gmra.mxu1 %v2217_v40  ;;  %2473 = vmatpush.msra.mxu2 %v4909_v14 }
 0x9da   :  { %2565 = vmatpush.msrb.mxu1 %v4894_v9  ;;  %2626 = vmatpush.msrb.mxu3 %v4983_v43 }
 0x9db   :  { %2476 = vmatpush.msra.mxu2 %v4914_v15  ;;  %2648 = vmatpush.msra.mxu0 %v4922_v18 }
 0x9dc   :  { %2673 = vmatpush.msra.mxu1 %v4897_v10 }
 0x9dd   :  { %2353 = vmatmul.f32.vlgmr.msrb.gmra.mxu2 %v2217_v40  ;;  %2509 = vmatmul.f32.vlgmr.msra.gmra.mxu3 %v2219_v50 }
 0x9de   :  { %2479 = vmatpush.msra.mxu2 %v4919_v17  ;;  %2725 = vmatpush.msra.mxu3 %v4897_v10 }
 0x9df   :  { %2542 = vmatmul.f32.vlgmr.msrb.gmra.mxu0 %v2217_v40  ;;  %2675 = vmatpush.msra.mxu1 %v4916_v16 }
 0x9e0   :  { %2589 = vmatpush.msrb.mxu2 %v4897_v10  ;;  %2651 = vmatpush.msra.mxu0 %v4937_v23 }
 0x9e1   :  { %2727 = vmatpush.msra.mxu3 %v4916_v16  ;;  %2567 = vmatmul.f32.vlgmr.msrb.gmra.mxu1 %v2217_v40 }
 0x9e2   :  { %2591 = vmatpush.msrb.mxu2 %v4916_v16  ;;  %2789 = vmatpush.msrb.mxu0 %v5034_v62 }
 0x9e3   :  { %2822 = vmatpush.msrb.mxu1 %v5060_v11 }
 0x9e4   :  { %2791 = vmatpush.msrb.mxu0 %v5036_v63 }
 0x9e5   :  { %2482 = vmatmul.f32.vlgmr.msra.gmra.mxu2 %v2218_v31  ;;  %2628 = vmatmul.f32.vlgmr.msrb.gmra.mxu3 %v2592_v47 }
 0x9e6   :  { %2700 = vmatpush.msra.mxu2 %v4944_v25  ;;  %2828 = vmatpush.msrb.mxu1 %v5062_v12 }
 0x9e7   :  { %2654 = vmatmul.f32.vlgmr.msra.gmra.mxu0 %v2593_v51  ;;  %2889 = vmatpush.msrb.mxu3 %v5034_v62 }
 0x9e8   :  { %2704 = vmatpush.msra.mxu2 %v4957_v30  ;;  %2834 = vmatpush.msrb.mxu1 %v5101_v42 }
 0x9e9   :  { %2679 = vmatmul.f32.vlgmr.msra.gmra.mxu1 %v2594_v52  ;;  %2891 = vmatpush.msrb.mxu3 %v5036_v63 }
 0x9ea   :  { %2840 = vmatpush.msrb.mxu1 %v5109_v46  ;;  %2793 = vmatpush.msrb.mxu0 %v5070_v29 }
 0x9eb   :  { %2893 = vmatpush.msrb.mxu3 %v5070_v29 }
 0x9ec   :  { %2949 = vmatpush.msra.mxu1 %v5034_v62  ;;  %2795 = vmatpush.msrb.mxu0 %v5078_v35 }
 0x9ed   :  { %2597 = vmatmul.f32.vlgmr.msrb.gmra.mxu2 %v2596_v54  ;;  %2729 = vmatmul.f32.vlgmr.msra.gmra.mxu3 %v2592_v47 }
 0x9ee   :  { %2860 = vmatpush.msrb.mxu2 %v5039_v0  ;;  %2895 = vmatpush.msrb.mxu3 %v5078_v35 }
 0x9ef   :  { %2951 = vmatpush.msra.mxu1 %v5036_v63  ;;  %2918 = vmatpush.msra.mxu0 %v5047_v2 }
 0x9f0   :  { %3011 = vmatpush.msra.mxu3 %v4963_v33  ;;  %2863 = vmatpush.msrb.mxu2 %v5042_v1 }
 0x9f1   :  { %2953 = vmatpush.msra.mxu1 %v5070_v29  ;;  %2922 = vmatpush.msra.mxu0 %v5050_v6 }
 0x9f2   :  { %3017 = vmatpush.msra.mxu3 %v4966_v34  ;;  %2866 = vmatpush.msrb.mxu2 %v5076_v32 }
 0x9f3   :  { %2955 = vmatpush.msra.mxu1 %v5078_v35  ;;  %2926 = vmatpush.msra.mxu0 %v5083_v36 }
 0x9f4   :  { %3023 = vmatpush.msra.mxu3 %v4979_v41  ;;  %2869 = vmatpush.msrb.mxu2 %v5086_v37 }
 0x9f5   :  { %2706 = vmatmul.f32.vlgmr.msra.gmra.mxu2 %v2592_v47  ;;  %2930 = vmatpush.msra.mxu0 %v5710_v27 }
 0x9f6   :  { %3029 = vmatpush.msra.mxu3 %v4986_v45  ;;  %2978 = vmatpush.msra.mxu2 %v4879_v3 }
 0x9f8   :  { %2980 = vmatpush.msra.mxu2 %v4881_v4 }
 0x9fa   :  { %2982 = vmatpush.msra.mxu2 %v4883_v5 }
 0x9fc   :  { %2984 = vmatpush.msra.mxu2 %v4894_v9 }
 0xa4c   :  { %v2294_v59 = vpop.f32.mrf.mxu0 }
 0xa4e   :  { %v2321_v58 = vpop.f32.mrf.mxu1 }
 0xa50   :  { %v2264_v56 = vpop.f32.mrf.mxu3 }
 0xa54   :  { %v2412_v40 = vpop.f32.mrf.mxu0 }
 0xa56   :  { %v2453_v48 = vpop.f32.mrf.mxu1 }
 0xa57   :  { %v2454_v28 = vadd.f32 %v2453_v48, %v2412_v40 }
 0xa58   :  { %v2223_v55 = vpop.f32.mrf.mxu2  ;;  %v2379_v19 = vpop.f32.mrf.mxu3 }
 0xa59   :  { %v2224_v7 = vadd.f32 %v5712_v57, %v2223_v55 }
 0xa5b   :  { %v2265_v49 = vadd.f32 %v2264_v56, %v2224_v7 }
 0xa5c   :  { %v2543_v52 = vpop.f32.mrf.mxu0 }
 0xa5d   :  { %v2295_v26 = vadd.f32 %v2294_v59, %v2265_v49 }
 0xa5e   :  { %v2568_v54 = vpop.f32.mrf.mxu1 }
 0xa5f   :  { %v2322_v8 = vadd.f32 %v2321_v58, %v2295_v26 }
 0xa60   :  { %v2354_v31 = vpop.f32.mrf.mxu2  ;;  %v2510_v44 = vpop.f32.mrf.mxu3 }
 0xa61   :  { %v2355_v50 = vadd.f32 %v2354_v31, %v2322_v8 }
 0xa63   :  { %v2380_v38 = vadd.f32 %v2379_v19, %v2355_v50 }
 0xa64   :  { %v2655_v7 = vpop.f32.mrf.mxu0 }
 0xa65   :  { %4731 = vst [vmem:[%s5696_s8 + $0x18] sm:$0xff] %v2380_v38 }
 0xa66   :  { %v2680_v26 = vpop.f32.mrf.mxu1 }
 0xa68   :  { %v2483_v47 = vpop.f32.mrf.mxu2  ;;  %v2629_v55 = vpop.f32.mrf.mxu3 }
 0xa69   :  { %v2484_v51 = vadd.f32 %v2483_v47, %v2454_v28 }
 0xa6b   :  { %v2511_v53 = vadd.f32 %v2510_v44, %v2484_v51 }
 0xa6d   :  { %v2544_v56 = vadd.f32 %v2543_v52, %v2511_v53 }
 0xa6f   :  { %v2569_v59 = vadd.f32 %v2568_v54, %v2544_v56 }
 0xa70   :  { %v2598_v58 = vpop.f32.mrf.mxu2  ;;  %v2730_v50 = vpop.f32.mrf.mxu3 }
 0xa71   :  { %v2599_v57 = vadd.f32 %v2598_v58, %v2569_v59 }
 0xa73   :  { %v2630_v49 = vadd.f32 %v2629_v55, %v2599_v57 }
 0xa75   :  { %v2656_v19 = vadd.f32 %v2655_v7, %v2630_v49 }
 0xa77   :  { %v2681_v8 = vadd.f32 %v2680_v26, %v2656_v19 }
 0xa78   :  { %v2707_v31 = vpop.f32.mrf.mxu2 }
 0xa79   :  { %v2708_v38 = vadd.f32 %v2707_v31, %v2681_v8 }
 0xa7b   :  { %v2731_v27 = vadd.f32 %v2730_v50, %v2708_v38 }
 0xa7d   :  { %v2733_v40 = vadd.f32 %v5354_v60, %v2731_v27 }
 0xa7f   :  { %4777 = vtanh.f32 %v2733_v40  ;;  %v2734_v44 = vsub.f32 0.0, %v2733_v40 }
 0xa81   :  { %v2735_v28 = vmul.f32 1.442695, %v2734_v44 }
 0xa83   :  { %4779 = vpow2.f32 %v2735_v28 }
 0xa85   :  { %v4778_v48 = vpop.eup %4777 }
 0xa86   :  { %2756 = vrot.lane.b32.xlu2 %v4778_v48, %s4812_s29 }
 0xa89   :  { %v4780_v47 = vpop.eup %4779 }
 0xa8a   :  { %v2737_v51 = vadd.f32 1.0, %v4780_v47 }
 0xa8c   :  { %4781 = vrcp.f32 %v2737_v51  ;;  %v2749_v59 = vand.u32 2147483648, %v2737_v51  ;;  %vm2743_vm5 = vweird.f32 %v2737_v51  ;;  %v2747_v58 = vand.u32 2147483647, %v2737_v51 }
 0xa8e   :  { %v2750_v57 = vor.u32 1.1754944e-38, %v2749_v59  ;;  %vm2748_vm7 = vcmp.eq.f32.partialorder %v2747_v58, 8.507059e+37 }
 0xa92   :  { %v4782_v52 = vpop.eup %4781 }
 0xa93   :  { %v2739_v53 = vmul.f32 %v4782_v52, %v2737_v51  ;;  %vm2744_vm4 = vweird.f32 %v4782_v52 }
 0xa94   :  { %vm2745_vm6 = vmor %vm2743_vm5, %vm2744_vm4 }
 0xa95   :  { %v2740_v54 = vsub.f32 1.0, %v2739_v53  ;;  %v4734_v53 = vld [vmem:[%s5691_s0 + $0x28] sm:$0xff] }
 0xa97   :  { %v2741_v56 = vmul.f32 %v4782_v52, %v2740_v54  ;;  %v3151_v54 = vsel %vm251_vm1, %v4734_v53, 0 }
 0xa99   :  { %v2742_v55 = vadd.f32 %v4782_v52, %v2741_v56  ;;  %v3171_v56 = vand.u32 4294901760, %v3151_v54 }
 0xa9b   :  { %v2746_v27 = vsel %vm2745_vm6, %v4782_v52, %v2742_v55  ;;  %v3172_v55 = vsub.f32 %v3151_v54, %v3171_v56 }
 0xa9c   :  { %v2751_v49 = vsel %vm2748_vm7, %v2750_v57, %v2746_v27  ;;  %v5713_v57 = vld [vmem:[#allocation4_spill] sm:$0xff] }
 0xa9d   :  { %v2754_v19 = vmul.f32 %v2751_v49, %v5360_v61  ;;  %v3173_v59 = vand.u32 4294901760, %v3172_v55 }
 0xa9f   :  { %v3174_v58 = vsub.f32 %v3172_v55, %v3173_v59 }
 0xaa1   :  { %v3175_v27 = vand.u32 4294901760, %v3174_v58 }
 0xae0   :  { %v2757_v7 = vpop.permute.xlu2 %2756 }
 0xae1   :  { %v2759_v26 = vmul.f32 %v2757_v7, %v2751_v49 }
 0xae3   :  { %2761 = vrot.lane.b32.xlu0 %v2759_v26, %s4813_s30 }
 0xb55   :  { %v2762_v8 = vpop.permute.xlu0 %2761 }
 0xb56   :  { %v5438_v31 = vadd.f32 %v2762_v8, %v2754_v19  ;;  %v5511_v19 = vld [vmem:[%s5695_s5] ss:$0 sm:$0xff] }
 0xb57   :  { %5714 = vst [vmem:[#allocation5_spill] sm:$0xff] %v5511_v19 }
 0xb58   :  { %4783 = vtanh.f32 %v5438_v31 }
 0xb5e   :  { %v4784_v50 = vpop.eup %4783 }
 0xb5f   :  { %2767 = vrot.lane.b32.xlu1 %v4784_v50, %s4812_s29 }
 0xbd1   :  { %v2768_v38 = vpop.permute.xlu1 %2767 }
 0xbd2   :  { %v2770_v40 = vmul.f32 %v2768_v38, %v2751_v49 }
 0xbd4   :  { %2772 = vrot.lane.b32.xlu2 %v2770_v40, %s4813_s30 }
 0xc2e   :  { %v2773_v48 = vpop.permute.xlu2 %2772 }
 0xc2f   :  { %v2774_v44 = vsel %vm37_vm0, %v2773_v48, 0 }
 0xc30   :  { %v2796_v28 = vand.u32 4294901760, %v2774_v44 }
 0xc32   :  { %v2797_v47 = vsub.f32 %v2774_v44, %v2796_v28  ;;  %2842 = vmatmul.f32.vlgmr.msrb.gmra.mxu1 %v2796_v28 }
 0xc33   :  { %3078 = vmatpush.msrb.mxu1 %v4879_v3 }
 0xc34   :  { %2872 = vmatmul.f32.vlgmr.msrb.gmra.mxu2 %v2797_v47  ;;  %v2798_v61 = vand.u32 4294901760, %v2797_v47 }
 0xc35   :  { %3080 = vmatpush.msrb.mxu1 %v4881_v4  ;;  %3107 = vmatpush.msrb.mxu2 %v4927_v20 }
 0xc36   :  { %2899 = vmatmul.f32.vlgmr.msrb.gmra.mxu3 %v2798_v61  ;;  %v2799_v51 = vsub.f32 %v2797_v47, %v2798_v61 }
 0xc37   :  { %3082 = vmatpush.msrb.mxu1 %v4883_v5  ;;  %3111 = vmatpush.msrb.mxu2 %v4931_v21 }
 0xc38   :  { %v2800_v52 = vand.u32 4294901760, %v2799_v51  ;;  %3138 = vmatpush.msrb.mxu3 %v4879_v3 }
 0xc39   :  { %3084 = vmatpush.msrb.mxu1 %v4894_v9  ;;  %3115 = vmatpush.msrb.mxu2 %v4934_v22 }
 0xc3a   :  { %2801 = vmatmul.f32.vlgmr.msrb.gmra.mxu0 %v2800_v52  ;;  %2957 = vmatmul.f32.vlgmr.msra.gmra.mxu1 %v2796_v28 }
 0xc3b   :  { %3140 = vmatpush.msrb.mxu3 %v4881_v4  ;;  %3049 = vmatpush.msrb.mxu0 %v4906_v13 }
 0xc3c   :  { %2990 = vmatmul.f32.vlgmr.msra.gmra.mxu2 %v2800_v52  ;;  %3199 = vmatpush.msra.mxu1 %v4975_v39 }
 0xc3d   :  { %3119 = vmatpush.msrb.mxu2 %v4941_v24  ;;  %3142 = vmatpush.msrb.mxu3 %v4883_v5 }
 0xc3e   :  { %3031 = vmatmul.f32.vlgmr.msra.gmra.mxu3 %v2796_v28  ;;  %3052 = vmatpush.msrb.mxu0 %v4909_v14 }
 0xc3f   :  { %3144 = vmatpush.msrb.mxu3 %v4894_v9  ;;  %3227 = vmatpush.msra.mxu2 %v4922_v18 }
 0xc40   :  { %3055 = vmatpush.msrb.mxu0 %v4914_v15  ;;  %3205 = vmatpush.msra.mxu1 %v4983_v43 }
 0xc41   :  { %3252 = vmatpush.msra.mxu3 %v4897_v10  ;;  %3230 = vmatpush.msra.mxu2 %v4937_v23 }
 0xc42   :  { %2932 = vmatmul.f32.vlgmr.msra.gmra.mxu0 %v2796_v28  ;;  %3088 = vmatmul.f32.vlgmr.msrb.gmra.mxu1 %v2798_v61 }
 0xc43   :  { %3058 = vmatpush.msrb.mxu0 %v4919_v17  ;;  %3254 = vmatpush.msra.mxu3 %v4916_v16 }
 0xc44   :  { %3121 = vmatmul.f32.vlgmr.msrb.gmra.mxu2 %v2796_v28  ;;  %3304 = vmatpush.msrb.mxu1 %v4897_v10 }
 0xc45   :  { %3168 = vmatpush.msra.mxu0 %v4897_v10  ;;  %3368 = vmatpush.msrb.mxu2 %v5034_v62 }
 0xc46   :  { %3146 = vmatmul.f32.vlgmr.msrb.gmra.mxu3 %v2796_v28  ;;  %3306 = vmatpush.msrb.mxu1 %v4916_v16 }
 0xc47   :  { %3170 = vmatpush.msra.mxu0 %v4916_v16  ;;  %3401 = vmatpush.msrb.mxu3 %v5060_v11 }
 0xc48   :  { %3370 = vmatpush.msrb.mxu2 %v5036_v63 }
 0xc49   :  { %3407 = vmatpush.msrb.mxu3 %v5062_v12 }
 0xc4a   :  { %3061 = vmatmul.f32.vlgmr.msrb.gmra.mxu0 %v2797_v47  ;;  %3207 = vmatmul.f32.vlgmr.msra.gmra.mxu1 %v3171_v56 }
 0xc4b   :  { %3279 = vmatpush.msrb.mxu0 %v4944_v25  ;;  %3413 = vmatpush.msrb.mxu3 %v5101_v42 }
 0xc4c   :  { %3233 = vmatmul.f32.vlgmr.msra.gmra.mxu2 %v3172_v55  ;;  %3468 = vmatpush.msra.mxu1 %v5034_v62 }
 0xc4d   :  { %3283 = vmatpush.msrb.mxu0 %v4957_v30  ;;  %3419 = vmatpush.msrb.mxu3 %v5109_v46 }
 0xc4e   :  { %3258 = vmatmul.f32.vlgmr.msra.gmra.mxu3 %v3173_v59  ;;  %3470 = vmatpush.msra.mxu1 %v5036_v63 }
 0xc4f   :  { %3528 = vmatpush.msra.mxu3 %v5034_v62  ;;  %3372 = vmatpush.msrb.mxu2 %v5070_v29 }
 0xc50   :  { %3472 = vmatpush.msra.mxu1 %v5070_v29 }
 0xc51   :  { %3530 = vmatpush.msra.mxu3 %v5036_v63  ;;  %3374 = vmatpush.msrb.mxu2 %v5078_v35 }
 0xc52   :  { %3176 = vmatmul.f32.vlgmr.msra.gmra.mxu0 %v3175_v27  ;;  %3308 = vmatmul.f32.vlgmr.msrb.gmra.mxu1 %v3171_v56 }
 0xc53   :  { %3439 = vmatpush.msra.mxu0 %v5039_v0  ;;  %3474 = vmatpush.msra.mxu1 %v5078_v35 }
 0xc54   :  { %3532 = vmatpush.msra.mxu3 %v5070_v29  ;;  %3497 = vmatpush.msra.mxu2 %v5047_v2 }
 0xc55   :  { %3590 = vmatpush.msrb.mxu1 %v4963_v33  ;;  %3442 = vmatpush.msra.mxu0 %v5042_v1 }
 0xc56   :  { %3534 = vmatpush.msra.mxu3 %v5078_v35  ;;  %3501 = vmatpush.msra.mxu2 %v5050_v6 }
 0xc57   :  { %3596 = vmatpush.msrb.mxu1 %v4966_v34  ;;  %3445 = vmatpush.msra.mxu0 %v5076_v32 }
 0xc58   :  { %3505 = vmatpush.msra.mxu2 %v5083_v36 }
 0xc59   :  { %3602 = vmatpush.msrb.mxu1 %v4979_v41  ;;  %3448 = vmatpush.msra.mxu0 %v5086_v37 }
 0xc5a   :  { %3285 = vmatmul.f32.vlgmr.msrb.gmra.mxu0 %v3171_v56  ;;  %3509 = vmatpush.msra.mxu2 %v5713_v57 }
 0xc5b   :  { %3608 = vmatpush.msrb.mxu1 %v4986_v45  ;;  %3557 = vmatpush.msrb.mxu0 %v4879_v3 }
 0xc5d   :  { %3559 = vmatpush.msrb.mxu0 %v4881_v4 }
 0xc5f   :  { %3561 = vmatpush.msrb.mxu0 %v4883_v5 }
 0xc61   :  { %3563 = vmatpush.msrb.mxu0 %v4894_v9 }
 0xcaf   :  { %v2843_v7 = vpop.f32.mrf.mxu1 }
 0xcb7   :  { %v2802_v49 = vpop.f32.mrf.mxu0  ;;  %v2873_v26 = vpop.f32.mrf.mxu2 }
 0xcb8   :  { %v2803_v8 = vadd.f32 %v5511_v19, %v2802_v49  ;;  %v2958_v40 = vpop.f32.mrf.mxu1 }
 0xcb9   :  { %v2900_v50 = vpop.f32.mrf.mxu3 }
 0xcba   :  { %v2844_v38 = vadd.f32 %v2843_v7, %v2803_v8 }
 0xcbc   :  { %v2874_v48 = vadd.f32 %v2873_v26, %v2844_v38 }
 0xcbe   :  { %v2901_v44 = vadd.f32 %v2900_v50, %v2874_v48 }
 0xcbf   :  { %v2933_v28 = vpop.f32.mrf.mxu0  ;;  %v2991_v47 = vpop.f32.mrf.mxu2 }
 0xcc0   :  { %v2934_v61 = vadd.f32 %v2933_v28, %v2901_v44  ;;  %v3089_v53 = vpop.f32.mrf.mxu1 }
 0xcc1   :  { %v3032_v51 = vpop.f32.mrf.mxu3 }
 0xcc2   :  { %v2959_v52 = vadd.f32 %v2958_v40, %v2934_v61  ;;  %v3033_v54 = vadd.f32 %v3032_v51, %v2991_v47 }
 0xcc4   :  { %4733 = vst [vmem:[%s5696_s8 + $0x20] sm:$0xff] %v2959_v52 }
 0xcc7   :  { %v3062_v56 = vpop.f32.mrf.mxu0  ;;  %v3122_v59 = vpop.f32.mrf.mxu2 }
 0xcc8   :  { %v3063_v55 = vadd.f32 %v3062_v56, %v3033_v54  ;;  %v3208_v49 = vpop.f32.mrf.mxu1 }
 0xcc9   :  { %v3147_v27 = vpop.f32.mrf.mxu3 }
 0xcca   :  { %v3090_v58 = vadd.f32 %v3089_v53, %v3063_v55 }
 0xccc   :  { %v3123_v7 = vadd.f32 %v3122_v59, %v3090_v58 }
 0xcce   :  { %v3148_v26 = vadd.f32 %v3147_v27, %v3123_v7 }
 0xccf   :  { %v3177_v8 = vpop.f32.mrf.mxu0  ;;  %v3234_v38 = vpop.f32.mrf.mxu2 }
 0xcd0   :  { %v3178_v50 = vadd.f32 %v3177_v8, %v3148_v26  ;;  %v3309_v19 = vpop.f32.mrf.mxu1 }
 0xcd1   :  { %v3259_v44 = vpop.f32.mrf.mxu3 }
 0xcd2   :  { %v3209_v48 = vadd.f32 %v3208_v49, %v3178_v50 }
 0xcd4   :  { %v3235_v40 = vadd.f32 %v3234_v38, %v3209_v48 }
 0xcd6   :  { %v3260_v28 = vadd.f32 %v3259_v44, %v3235_v40 }
 0xcd7   :  { %v3286_v61 = vpop.f32.mrf.mxu0 }
 0xcd8   :  { %v3287_v52 = vadd.f32 %v3286_v61, %v3260_v28 }
 0xcda   :  { %v3310_v57 = vadd.f32 %v3309_v19, %v3287_v52 }
 0xcdc   :  { %v3312_v47 = vadd.f32 %v5354_v60, %v3310_v57 }
 0xcde   :  { %4785 = vtanh.f32 %v3312_v47  ;;  %v3313_v53 = vsub.f32 0.0, %v3312_v47 }
 0xce0   :  { %v3314_v54 = vmul.f32 1.442695, %v3313_v53 }
 0xce2   :  { %4787 = vpow2.f32 %v3314_v54 }
 0xce4   :  { %v4786_v51 = vpop.eup %4785 }
 0xce5   :  { %3335 = vrot.lane.b32.xlu0 %v4786_v51, %s4812_s29 }
 0xce8   :  { %v4788_v56 = vpop.eup %4787 }
 0xce9   :  { %v3316_v55 = vadd.f32 1.0, %v4788_v56 }
 0xceb   :  { %4789 = vrcp.f32 %v3316_v55  ;;  %v3328_v26 = vand.u32 2147483648, %v3316_v55  ;;  %vm3322_vm9 = vweird.f32 %v3316_v55  ;;  %v3326_v19 = vand.u32 2147483647, %v3316_v55 }
 0xced   :  { %v3329_v8 = vor.u32 1.1754944e-38, %v3328_v26  ;;  %vm3327_vm11 = vcmp.eq.f32.partialorder %v3326_v19, 8.507059e+37 }
 0xcf1   :  { %v4790_v59 = vpop.eup %4789 }
 0xcf2   :  { %v3318_v58 = vmul.f32 %v4790_v59, %v3316_v55  ;;  %vm3323_vm8 = vweird.f32 %v4790_v59 }
 0xcf3   :  { %vm3324_vm10 = vmor %vm3322_vm9, %vm3323_vm8 }
 0xcf4   :  { %v3319_v27 = vsub.f32 1.0, %v3318_v58  ;;  %v4736_v58 = vld [vmem:[%s5691_s0 + $0x30] sm:$0xff] }
 0xcf6   :  { %v3320_v7 = vmul.f32 %v4790_v59, %v3319_v27  ;;  %v3730_v27 = vsel %vm251_vm1, %v4736_v58, 0 }
 0xcf8   :  { %v3321_v49 = vadd.f32 %v4790_v59, %v3320_v7  ;;  %v3750_v7 = vand.u32 4294901760, %v3730_v27 }
 0xcfa   :  { %v3325_v57 = vsel %vm3324_vm10, %v4790_v59, %v3321_v49  ;;  %v3751_v49 = vsub.f32 %v3730_v27, %v3750_v7 }
 0xcfb   :  { %v3330_v38 = vsel %vm3327_vm11, %v3329_v8, %v3325_v57 }
 0xcfc   :  { %v3333_v44 = vmul.f32 %v3330_v38, %v5438_v31  ;;  %v3752_v26 = vand.u32 4294901760, %v3751_v49 }
 0xcfe   :  { %v3753_v19 = vsub.f32 %v3751_v49, %v3752_v26 }
 0xd00   :  { %v3754_v57 = vand.u32 4294901760, %v3753_v19 }
 0xd57   :  { %v3336_v50 = vpop.permute.xlu0 %3335 }
 0xd58   :  { %v3338_v48 = vmul.f32 %v3336_v50, %v3330_v38 }
 0xd5a   :  { %3340 = vrot.lane.b32.xlu1 %v3338_v48, %s4813_s30 }
 0xdcc   :  { %v3341_v40 = vpop.permute.xlu1 %3340 }
 0xdcd   :  { %v5521_v28 = vadd.f32 %v3341_v40, %v3333_v44 }
 0xdcf   :  { %4791 = vtanh.f32 %v5521_v28 }
 0xdd5   :  { %v4792_v61 = vpop.eup %4791 }
 0xdd6   :  { %3346 = vrot.lane.b32.xlu2 %v4792_v61, %s4812_s29 }
 0xe30   :  { %v3347_v52 = vpop.permute.xlu2 %3346 }
 0xe31   :  { %v3349_v47 = vmul.f32 %v3347_v52, %v3330_v38  ;;  %v5716_v38 = vld [vmem:[#allocation5_spill] sm:$0xff] }
 0xe33   :  { %3351 = vrot.lane.b32.xlu0 %v3349_v47, %s4813_s30 }
 0xea5   :  { %v3352_v51 = vpop.permute.xlu0 %3351 }
 0xea6   :  { %v3353_v53 = vsel %vm37_vm0, %v3352_v51, 0 }
 0xea7   :  { %v3375_v54 = vand.u32 4294901760, %v3353_v53 }
 0xea9   :  { %v3376_v56 = vsub.f32 %v3353_v53, %v3375_v54  ;;  %3421 = vmatmul.f32.vlgmr.msrb.gmra.mxu3 %v3375_v54 }
 0xeaa   :  { %3657 = vmatpush.msrb.mxu3 %v4879_v3 }
 0xeab   :  { %v3377_v31 = vand.u32 4294901760, %v3376_v56  ;;  %3451 = vmatmul.f32.vlgmr.msra.gmra.mxu0 %v3376_v56 }
 0xeac   :  { %3659 = vmatpush.msrb.mxu3 %v4881_v4  ;;  %3686 = vmatpush.msra.mxu0 %v4927_v20 }
 0xead   :  { %v3378_v55 = vsub.f32 %v3376_v56, %v3377_v31  ;;  %3478 = vmatmul.f32.vlgmr.msra.gmra.mxu1 %v3377_v31 }
 0xeae   :  { %3661 = vmatpush.msrb.mxu3 %v4883_v5  ;;  %3690 = vmatpush.msra.mxu0 %v4931_v21 }
 0xeaf   :  { %v3379_v59 = vand.u32 4294901760, %v3378_v55  ;;  %3717 = vmatpush.msra.mxu1 %v4879_v3 }
 0xeb0   :  { %3663 = vmatpush.msrb.mxu3 %v4894_v9  ;;  %3694 = vmatpush.msra.mxu0 %v4934_v22 }
 0xeb1   :  { %3380 = vmatmul.f32.vlgmr.msrb.gmra.mxu2 %v3379_v59  ;;  %3536 = vmatmul.f32.vlgmr.msra.gmra.mxu3 %v3375_v54 }
 0xeb2   :  { %3719 = vmatpush.msra.mxu1 %v4881_v4  ;;  %3628 = vmatpush.msrb.mxu2 %v4906_v13 }
 0xeb3   :  { %3569 = vmatmul.f32.vlgmr.msrb.gmra.mxu0 %v3379_v59  ;;  %3778 = vmatpush.msra.mxu3 %v4975_v39 }
 0xeb4   :  { %3698 = vmatpush.msra.mxu0 %v4941_v24  ;;  %3721 = vmatpush.msra.mxu1 %v4883_v5 }
 0xeb5   :  { %3610 = vmatmul.f32.vlgmr.msrb.gmra.mxu1 %v3375_v54  ;;  %3631 = vmatpush.msrb.mxu2 %v4909_v14 }
 0xeb6   :  { %3723 = vmatpush.msra.mxu1 %v4894_v9  ;;  %3784 = vmatpush.msra.mxu3 %v4983_v43 }
 0xeb7   :  { %3634 = vmatpush.msrb.mxu2 %v4914_v15  ;;  %3806 = vmatpush.msrb.mxu0 %v4922_v18 }
 0xeb8   :  { %3831 = vmatpush.msrb.mxu1 %v4897_v10 }
 0xeb9   :  { %3511 = vmatmul.f32.vlgmr.msra.gmra.mxu2 %v3375_v54  ;;  %3667 = vmatmul.f32.vlgmr.msrb.gmra.mxu3 %v3377_v31 }
 0xeba   :  { %3637 = vmatpush.msrb.mxu2 %v4919_v17  ;;  %3883 = vmatpush.msrb.mxu3 %v4897_v10 }
 0xebb   :  { %3700 = vmatmul.f32.vlgmr.msra.gmra.mxu0 %v3375_v54  ;;  %3833 = vmatpush.msrb.mxu1 %v4916_v16 }
 0xebc   :  { %3747 = vmatpush.msra.mxu2 %v4897_v10  ;;  %3809 = vmatpush.msrb.mxu0 %v4937_v23 }
 0xebd   :  { %3885 = vmatpush.msrb.mxu3 %v4916_v16  ;;  %3725 = vmatmul.f32.vlgmr.msra.gmra.mxu1 %v3375_v54 }
 0xebe   :  { %3749 = vmatpush.msra.mxu2 %v4916_v16  ;;  %3947 = vmatpush.msra.mxu0 %v5034_v62 }
 0xebf   :  { %3980 = vmatpush.msra.mxu1 %v5060_v11 }
 0xec0   :  { %3949 = vmatpush.msra.mxu0 %v5036_v63 }
 0xec1   :  { %3640 = vmatmul.f32.vlgmr.msrb.gmra.mxu2 %v3376_v56  ;;  %3786 = vmatmul.f32.vlgmr.msra.gmra.mxu3 %v3750_v7 }
 0xec2   :  { %3858 = vmatpush.msrb.mxu2 %v4944_v25  ;;  %3986 = vmatpush.msra.mxu1 %v5062_v12 }
 0xec3   :  { %3812 = vmatmul.f32.vlgmr.msrb.gmra.mxu0 %v3751_v49  ;;  %4047 = vmatpush.msra.mxu3 %v5034_v62 }
 0xec4   :  { %3862 = vmatpush.msrb.mxu2 %v4957_v30  ;;  %3992 = vmatpush.msra.mxu1 %v5101_v42 }
 0xec5   :  { %3837 = vmatmul.f32.vlgmr.msrb.gmra.mxu1 %v3752_v26  ;;  %4049 = vmatpush.msra.mxu3 %v5036_v63 }
 0xec6   :  { %3998 = vmatpush.msra.mxu1 %v5109_v46  ;;  %3951 = vmatpush.msra.mxu0 %v5070_v29 }
 0xec7   :  { %4051 = vmatpush.msra.mxu3 %v5070_v29 }
 0xec8   :  { %4107 = vmatpush.msrb.mxu1 %v5034_v62  ;;  %3953 = vmatpush.msra.mxu0 %v5078_v35 }
 0xec9   :  { %3755 = vmatmul.f32.vlgmr.msra.gmra.mxu2 %v3754_v57  ;;  %3887 = vmatmul.f32.vlgmr.msrb.gmra.mxu3 %v3750_v7 }
 0xeca   :  { %4018 = vmatpush.msra.mxu2 %v5039_v0  ;;  %4053 = vmatpush.msra.mxu3 %v5078_v35 }
 0xecb   :  { %4109 = vmatpush.msrb.mxu1 %v5036_v63  ;;  %4076 = vmatpush.msrb.mxu0 %v5047_v2 }
 0xecc   :  { %4169 = vmatpush.msrb.mxu3 %v4963_v33  ;;  %4021 = vmatpush.msra.mxu2 %v5042_v1  ;;  %v5715_v33 = vld [vmem:[#allocation4_spill] sm:$0xff] }
 0xecd   :  { %4111 = vmatpush.msrb.mxu1 %v5070_v29  ;;  %4080 = vmatpush.msrb.mxu0 %v5050_v6 }
 0xece   :  { %4175 = vmatpush.msrb.mxu3 %v4966_v34  ;;  %4024 = vmatpush.msra.mxu2 %v5076_v32 }
 0xecf   :  { %4113 = vmatpush.msrb.mxu1 %v5078_v35  ;;  %4084 = vmatpush.msrb.mxu0 %v5083_v36 }
 0xed0   :  { %4181 = vmatpush.msrb.mxu3 %v4979_v41  ;;  %4027 = vmatpush.msra.mxu2 %v5086_v37 }
 0xed1   :  { %3864 = vmatmul.f32.vlgmr.msrb.gmra.mxu2 %v3750_v7  ;;  %4088 = vmatpush.msrb.mxu0 %v5715_v33 }
 0xed2   :  { %4187 = vmatpush.msrb.mxu3 %v4986_v45  ;;  %4136 = vmatpush.msrb.mxu2 %v4879_v3 }
 0xed4   :  { %4138 = vmatpush.msrb.mxu2 %v4881_v4 }
 0xed6   :  { %4140 = vmatpush.msrb.mxu2 %v4883_v5 }
 0xed8   :  { %4142 = vmatpush.msrb.mxu2 %v4894_v9 }
 0xf28   :  { %v3452_v8 = vpop.f32.mrf.mxu0 }
 0xf2a   :  { %v3479_v41 = vpop.f32.mrf.mxu1 }
 0xf2c   :  { %v3422_v34 = vpop.f32.mrf.mxu3 }
 0xf30   :  { %v3570_v52 = vpop.f32.mrf.mxu0 }
 0xf32   :  { %v3611_v53 = vpop.f32.mrf.mxu1 }
 0xf33   :  { %v3612_v31 = vadd.f32 %v3611_v53, %v3570_v52 }
 0xf34   :  { %v3381_v50 = vpop.f32.mrf.mxu2  ;;  %v3537_v40 = vpop.f32.mrf.mxu3 }
 0xf35   :  { %v3382_v48 = vadd.f32 %v5716_v38, %v3381_v50 }
 0xf37   :  { %v3423_v44 = vadd.f32 %v3422_v34, %v3382_v48 }
 0xf38   :  { %v3701_v58 = vpop.f32.mrf.mxu0 }
 0xf39   :  { %v3453_v61 = vadd.f32 %v3452_v8, %v3423_v44 }
 0xf3a   :  { %v3726_v7 = vpop.f32.mrf.mxu1 }
 0xf3b   :  { %v3480_v45 = vadd.f32 %v3479_v41, %v3453_v61 }
 0xf3c   :  { %v3512_v47 = vpop.f32.mrf.mxu2  ;;  %v3668_v56 = vpop.f32.mrf.mxu3 }
 0xf3d   :  { %v3513_v51 = vadd.f32 %v3512_v47, %v3480_v45 }
 0xf3f   :  { %v3538_v54 = vadd.f32 %v3537_v40, %v3513_v51 }
 0xf40   :  { %v3813_v8 = vpop.f32.mrf.mxu0 }
 0xf41   :  { %4735 = vst [vmem:[%s5696_s8 + $0x28] sm:$0xff] %v3538_v54 }
 0xf42   :  { %v3838_v50 = vpop.f32.mrf.mxu1 }
 0xf44   :  { %v3641_v55 = vpop.f32.mrf.mxu2  ;;  %v3787_v26 = vpop.f32.mrf.mxu3 }
 0xf45   :  { %v3642_v59 = vadd.f32 %v3641_v55, %v3612_v31 }
 0xf47   :  { %v3669_v27 = vadd.f32 %v3668_v56, %v3642_v59 }
 0xf49   :  { %v3702_v49 = vadd.f32 %v3701_v58, %v3669_v27 }
 0xf4b   :  { %v3727_v19 = vadd.f32 %v3726_v7, %v3702_v49 }
 0xf4c   :  { %v3756_v57 = vpop.f32.mrf.mxu2  ;;  %v3888_v61 = vpop.f32.mrf.mxu3 }
 0xf4d   :  { %v3757_v34 = vadd.f32 %v3756_v57, %v3727_v19 }
 0xf4f   :  { %v3788_v41 = vadd.f32 %v3787_v26, %v3757_v34 }
 0xf51   :  { %v3814_v48 = vadd.f32 %v3813_v8, %v3788_v41 }
 0xf53   :  { %v3839_v44 = vadd.f32 %v3838_v50, %v3814_v48 }
 0xf54   :  { %v3865_v40 = vpop.f32.mrf.mxu2 }
 0xf55   :  { %v3866_v45 = vadd.f32 %v3865_v40, %v3839_v44 }
 0xf57   :  { %v3889_v47 = vadd.f32 %v3888_v61, %v3866_v45 }
 0xf59   :  { %v3891_v52 = vadd.f32 %v5354_v60, %v3889_v47 }
 0xf5b   :  { %4793 = vtanh.f32 %v3891_v52  ;;  %v3892_v53 = vsub.f32 0.0, %v3891_v52 }
 0xf5d   :  { %v3893_v54 = vmul.f32 1.442695, %v3892_v53 }
 0xf5f   :  { %4795 = vpow2.f32 %v3893_v54 }
 0xf61   :  { %v4794_v51 = vpop.eup %4793 }
 0xf62   :  { %3914 = vrot.lane.b32.xlu1 %v4794_v51, %s4812_s29 }
 0xf65   :  { %v4796_v56 = vpop.eup %4795 }
 0xf66   :  { %v3895_v31 = vadd.f32 1.0, %v4796_v56  ;;  %v4738_v56 = vld [vmem:[%s5691_s0 + $0x38] sm:$0xff] }
 0xf68   :  { %4797 = vrcp.f32 %v3895_v31  ;;  %v3907_v49 = vand.u32 2147483648, %v3895_v31  ;;  %vm3901_vm13 = vweird.f32 %v3895_v31  ;;  %v3905_v26 = vand.u32 2147483647, %v3895_v31 }
 0xf6a   :  { %v3908_v19 = vor.u32 1.1754944e-38, %v3907_v49  ;;  %vm3906_vm15 = vcmp.eq.f32.partialorder %v3905_v26, 8.507059e+37 }
 0xf6e   :  { %v4798_v55 = vpop.eup %4797 }
 0xf6f   :  { %v3897_v59 = vmul.f32 %v4798_v55, %v3895_v31  ;;  %vm3902_vm12 = vweird.f32 %v4798_v55 }
 0xf70   :  { %vm3903_vm14 = vmor %vm3901_vm13, %vm3902_vm12 }
 0xf71   :  { %v3898_v58 = vsub.f32 1.0, %v3897_v59 }
 0xf73   :  { %v3899_v27 = vmul.f32 %v4798_v55, %v3898_v58 }
 0xf75   :  { %v3900_v7 = vadd.f32 %v4798_v55, %v3899_v27 }
 0xf77   :  { %v3904_v60 = vsel %vm3903_vm14, %v4798_v55, %v3900_v7  ;;  %v4811_v7 = vld [vmem:[%s5692_s2] ss:$0 sm:$0xff]  ;;  %s4814_s2 = smov 96  }
 0xf78   :  { %v3909_v34 = vsel %vm3906_vm15, %v3908_v19, %v3904_v60 }
 0xf79   :  { %v3912_v41 = vmul.f32 %v3909_v34, %v5521_v28 }
 0xfd4   :  { %v3915_v57 = vpop.permute.xlu1 %3914 }
 0xfd5   :  { %v3917_v8 = vmul.f32 %v3915_v57, %v3909_v34 }
 0xfd7   :  { %3919 = vrot.lane.b32.xlu2 %v3917_v8, %s4813_s30 }
0x1031   :  { %v3920_v50 = vpop.permute.xlu2 %3919 }
0x1032   :  { %v5599_v48 = vadd.f32 %v3920_v50, %v3912_v41 }
0x1034   :  { %4799 = vtanh.f32 %v5599_v48 }
0x103a   :  { %v4800_v44 = vpop.eup %4799 }
0x103b   :  { %3925 = vrot.lane.b32.xlu0 %v4800_v44, %s4812_s29 }
0x10ad   :  { %v3926_v40 = vpop.permute.xlu0 %3925 }
0x10ae   :  { %v3928_v61 = vmul.f32 %v3926_v40, %v3909_v34 }
0x10b0   :  { %3930 = vrot.lane.b32.xlu1 %v3928_v61, %s4813_s30 }
0x1122   :  { %v3931_v45 = vpop.permute.xlu1 %3930 }
0x1123   :  { %v3932_v47 = vsel %vm37_vm0, %v3931_v45, 0 }
0x1124   :  { %v3954_v52 = vand.u32 4294901760, %v3932_v47 }
0x1126   :  { %v3955_v51 = vsub.f32 %v3932_v47, %v3954_v52  ;;  %4000 = vmatmul.f32.vlgmr.msra.gmra.mxu1 %v3954_v52 }
0x1127   :  { %4236 = vmatpush.msra.mxu1 %v4879_v3 }
0x1128   :  { %v3956_v28 = vand.u32 4294901760, %v3955_v51  ;;  %4030 = vmatmul.f32.vlgmr.msra.gmra.mxu2 %v3955_v51 }
0x1129   :  { %4238 = vmatpush.msra.mxu1 %v4881_v4  ;;  %4265 = vmatpush.msra.mxu2 %v4927_v20  ;;  %v4309_v20 = vsel %vm251_vm1, %v4738_v56, 0 }
0x112a   :  { %v3957_v53 = vsub.f32 %v3955_v51, %v3956_v28  ;;  %4057 = vmatmul.f32.vlgmr.msra.gmra.mxu3 %v3956_v28 }
0x112b   :  { %4240 = vmatpush.msra.mxu1 %v4883_v5  ;;  %4269 = vmatpush.msra.mxu2 %v4931_v21 }
0x112c   :  { %v3958_v54 = vand.u32 4294901760, %v3957_v53  ;;  %4296 = vmatpush.msra.mxu3 %v4879_v3  ;;  %v4329_v3 = vand.u32 4294901760, %v4309_v20 }
0x112d   :  { %4242 = vmatpush.msra.mxu1 %v4894_v9  ;;  %4273 = vmatpush.msra.mxu2 %v4934_v22 }
0x112e   :  { %3959 = vmatmul.f32.vlgmr.msra.gmra.mxu0 %v3958_v54  ;;  %4115 = vmatmul.f32.vlgmr.msrb.gmra.mxu1 %v3954_v52 }
0x112f   :  { %4298 = vmatpush.msra.mxu3 %v4881_v4  ;;  %4207 = vmatpush.msra.mxu0 %v4906_v13  ;;  %v4330_v4 = vsub.f32 %v4309_v20, %v4329_v3 }
0x1130   :  { %4148 = vmatmul.f32.vlgmr.msrb.gmra.mxu2 %v3958_v54  ;;  %4357 = vmatpush.msrb.mxu1 %v4975_v39 }
0x1131   :  { %4277 = vmatpush.msra.mxu2 %v4941_v24  ;;  %4300 = vmatpush.msra.mxu3 %v4883_v5  ;;  %v4331_v5 = vand.u32 4294901760, %v4330_v4 }
0x1132   :  { %4189 = vmatmul.f32.vlgmr.msrb.gmra.mxu3 %v3954_v52  ;;  %4210 = vmatpush.msra.mxu0 %v4909_v14 }
0x1133   :  { %4302 = vmatpush.msra.mxu3 %v4894_v9  ;;  %4385 = vmatpush.msrb.mxu2 %v4922_v18  ;;  %v4332_v9 = vsub.f32 %v4330_v4, %v4331_v5 }
0x1134   :  { %4213 = vmatpush.msra.mxu0 %v4914_v15  ;;  %4363 = vmatpush.msrb.mxu1 %v4983_v43 }
0x1135   :  { %4410 = vmatpush.msrb.mxu3 %v4897_v10  ;;  %4388 = vmatpush.msrb.mxu2 %v4937_v23 }
0x1136   :  { %4090 = vmatmul.f32.vlgmr.msrb.gmra.mxu0 %v3954_v52  ;;  %4246 = vmatmul.f32.vlgmr.msra.gmra.mxu1 %v3956_v28 }
0x1137   :  { %4216 = vmatpush.msra.mxu0 %v4919_v17  ;;  %4412 = vmatpush.msrb.mxu3 %v4916_v16 }
0x1138   :  { %4279 = vmatmul.f32.vlgmr.msra.gmra.mxu2 %v3954_v52  ;;  %4462 = vmatpush.msra.mxu1 %v4897_v10 }
0x1139   :  { %4326 = vmatpush.msrb.mxu0 %v4897_v10  ;;  %4526 = vmatpush.msra.mxu2 %v5034_v62  ;;  %v4333_v10 = vand.u32 4294901760, %v4332_v9 }
0x113a   :  { %4304 = vmatmul.f32.vlgmr.msra.gmra.mxu3 %v3954_v52  ;;  %4464 = vmatpush.msra.mxu1 %v4916_v16 }
0x113b   :  { %4328 = vmatpush.msrb.mxu0 %v4916_v16  ;;  %4559 = vmatpush.msra.mxu3 %v5060_v11 }
0x113c   :  { %4528 = vmatpush.msra.mxu2 %v5036_v63 }
0x113d   :  { %4565 = vmatpush.msra.mxu3 %v5062_v12 }
0x113e   :  { %4219 = vmatmul.f32.vlgmr.msra.gmra.mxu0 %v3955_v51  ;;  %4365 = vmatmul.f32.vlgmr.msrb.gmra.mxu1 %v4329_v3 }
0x113f   :  { %4437 = vmatpush.msra.mxu0 %v4944_v25  ;;  %4571 = vmatpush.msra.mxu3 %v5101_v42 }
0x1140   :  { %4391 = vmatmul.f32.vlgmr.msrb.gmra.mxu2 %v4330_v4  ;;  %4626 = vmatpush.msrb.mxu1 %v5034_v62 }
0x1141   :  { %4441 = vmatpush.msra.mxu0 %v4957_v30  ;;  %4577 = vmatpush.msra.mxu3 %v5109_v46 }
0x1142   :  { %4416 = vmatmul.f32.vlgmr.msrb.gmra.mxu3 %v4331_v5  ;;  %4628 = vmatpush.msrb.mxu1 %v5036_v63 }
0x1143   :  { %4686 = vmatpush.msrb.mxu3 %v5034_v62  ;;  %4530 = vmatpush.msra.mxu2 %v5070_v29 }
0x1144   :  { %4630 = vmatpush.msrb.mxu1 %v5070_v29 }
0x1145   :  { %4688 = vmatpush.msrb.mxu3 %v5036_v63  ;;  %4532 = vmatpush.msra.mxu2 %v5078_v35 }
0x1146   :  { %4334 = vmatmul.f32.vlgmr.msrb.gmra.mxu0 %v4333_v10  ;;  %4466 = vmatmul.f32.vlgmr.msra.gmra.mxu1 %v4329_v3 }
0x1147   :  { %4597 = vmatpush.msrb.mxu0 %v5039_v0  ;;  %4632 = vmatpush.msrb.mxu1 %v5078_v35 }
0x1148   :  { %4690 = vmatpush.msrb.mxu3 %v5070_v29  ;;  %4655 = vmatpush.msrb.mxu2 %v5047_v2 }
0x1149   :  { %4600 = vmatpush.msrb.mxu0 %v5042_v1 }
0x114a   :  { %4692 = vmatpush.msrb.mxu3 %v5078_v35  ;;  %4659 = vmatpush.msrb.mxu2 %v5050_v6 }
0x114b   :  { %4603 = vmatpush.msrb.mxu0 %v5076_v32 }
0x114c   :  { %4663 = vmatpush.msrb.mxu2 %v5083_v36 }
0x114d   :  { %4606 = vmatpush.msrb.mxu0 %v5086_v37 }
0x114e   :  { %4443 = vmatmul.f32.vlgmr.msra.gmra.mxu0 %v4329_v3  ;;  %4667 = vmatpush.msrb.mxu2 %v5715_v33 }
0x11a3   :  { %v4001_v13 = vpop.f32.mrf.mxu1 }
0x11ab   :  { %v3960_v14 = vpop.f32.mrf.mxu0  ;;  %v4031_v15 = vpop.f32.mrf.mxu2 }
0x11ac   :  { %v3961_v16 = vadd.f32 %v5716_v38, %v3960_v14  ;;  %v4116_v21 = vpop.f32.mrf.mxu1 }
0x11ad   :  { %v4058_v17 = vpop.f32.mrf.mxu3 }
0x11ae   :  { %v4002_v18 = vadd.f32 %v4001_v13, %v3961_v16 }
0x11b0   :  { %v4032_v22 = vadd.f32 %v4031_v15, %v4002_v18 }
0x11b2   :  { %v4059_v23 = vadd.f32 %v4058_v17, %v4032_v22 }
0x11b3   :  { %v4091_v24 = vpop.f32.mrf.mxu0  ;;  %v4149_v25 = vpop.f32.mrf.mxu2 }
0x11b4   :  { %v4092_v30 = vadd.f32 %v4091_v24, %v4059_v23  ;;  %v4247_v62 = vpop.f32.mrf.mxu1 }
0x11b5   :  { %v4190_v39 = vpop.f32.mrf.mxu3 }
0x11b6   :  { %v4117_v43 = vadd.f32 %v4116_v21, %v4092_v30  ;;  %v4191_v63 = vadd.f32 %v4190_v39, %v4149_v25 }
0x11b8   :  { %4737 = vst [vmem:[%s5696_s8 + $0x30] sm:$0xff] %v4117_v43 }
0x11bb   :  { %v4220_v0 = vpop.f32.mrf.mxu0  ;;  %v4280_v2 = vpop.f32.mrf.mxu2 }
0x11bc   :  { %v4221_v1 = vadd.f32 %v4220_v0, %v4191_v63  ;;  %v4366_v29 = vpop.f32.mrf.mxu1 }
0x11bd   :  { %v4305_v11 = vpop.f32.mrf.mxu3 }
0x11be   :  { %v4248_v6 = vadd.f32 %v4247_v62, %v4221_v1 }
0x11c0   :  { %v4281_v12 = vadd.f32 %v4280_v2, %v4248_v6 }
0x11c2   :  { %v4306_v32 = vadd.f32 %v4305_v11, %v4281_v12 }
0x11c3   :  { %v4335_v35 = vpop.f32.mrf.mxu0  ;;  %v4392_v37 = vpop.f32.mrf.mxu2 }
0x11c4   :  { %v4336_v36 = vadd.f32 %v4335_v35, %v4306_v32  ;;  %v4467_v59 = vpop.f32.mrf.mxu1 }
0x11c5   :  { %v4417_v46 = vpop.f32.mrf.mxu3 }
0x11c6   :  { %v4367_v42 = vadd.f32 %v4366_v29, %v4336_v36 }
0x11c8   :  { %v4393_v33 = vadd.f32 %v4392_v37, %v4367_v42 }
0x11ca   :  { %v4418_v31 = vadd.f32 %v4417_v46, %v4393_v33 }
0x11cb   :  { %v4444_v55 = vpop.f32.mrf.mxu0 }
0x11cc   :  { %v4445_v58 = vadd.f32 %v4444_v55, %v4418_v31 }
0x11ce   :  { %v4468_v27 = vadd.f32 %v4467_v59, %v4445_v58 }
0x11d0   :  { %v4470_v49 = vadd.f32 %v4811_v7, %v4468_v27 }
0x11d2   :  { %4801 = vtanh.f32 %v4470_v49  ;;  %v4471_v60 = vsub.f32 0.0, %v4470_v49 }
0x11d4   :  { %v4472_v19 = vmul.f32 1.442695, %v4471_v60 }
0x11d6   :  { %4803 = vpow2.f32 %v4472_v19 }
0x11d8   :  { %v4802_v26 = vpop.eup %4801 }
0x11d9   :  { %4493 = vrot.lane.b32.xlu2 %v4802_v26, %s4812_s29 }
0x11dc   :  { %v4804_v57 = vpop.eup %4803 }
0x11dd   :  { %v4474_v34 = vadd.f32 1.0, %v4804_v57 }
0x11df   :  { %4805 = vrcp.f32 %v4474_v34  ;;  %v4486_v61 = vand.u32 2147483648, %v4474_v34  ;;  %vm4480_vm2 = vweird.f32 %v4474_v34  ;;  %v4484_v45 = vand.u32 2147483647, %v4474_v34 }
0x11e1   :  { %v4487_v52 = vor.u32 1.1754944e-38, %v4486_v61  ;;  %vm4485_vm4 = vcmp.eq.f32.partialorder %v4484_v45, 8.507059e+37 }
0x11e5   :  { %v4806_v8 = vpop.eup %4805 }
0x11e6   :  { %v4476_v41 = vmul.f32 %v4806_v8, %v4474_v34  ;;  %vm4481_vm1 = vweird.f32 %v4806_v8 }
0x11e7   :  { %vm4482_vm3 = vmor %vm4480_vm2, %vm4481_vm1 }
0x11e8   :  { %v4477_v50 = vsub.f32 1.0, %v4476_v41 }
0x11ea   :  { %v4478_v44 = vmul.f32 %v4806_v8, %v4477_v50 }
0x11ec   :  { %v4479_v40 = vadd.f32 %v4806_v8, %v4478_v44 }
0x11ee   :  { %v4483_v47 = vsel %vm4482_vm3, %v4806_v8, %v4479_v40 }
0x11ef   :  { %v4488_v28 = vsel %vm4485_vm4, %v4487_v52, %v4483_v47 }
0x11f0   :  { %v4491_v54 = vmul.f32 %v4488_v28, %v5599_v48 }
0x1233   :  { %v4494_v51 = vpop.permute.xlu2 %4493 }
0x1234   :  { %v4496_v53 = vmul.f32 %v4494_v51, %v4488_v28 }
0x1236   :  { %4498 = vrot.lane.b32.xlu0 %v4496_v53, %s4813_s30 }
0x12a8   :  { %v4499_v56 = vpop.permute.xlu0 %4498 }
0x12a9   :  { %v4501_v20 = vadd.f32 %v4499_v56, %v4491_v54 }
0x12ab   :  { %4807 = vtanh.f32 %v4501_v20  ;;  %4703 = vrot.lane.b32.xlu0 %v4501_v20, %s4814_s2 }
0x12b1   :  { %v4808_v3 = vpop.eup %4807 }
0x12b2   :  { %4504 = vrot.lane.b32.xlu1 %v4808_v3, %s4812_s29 }
0x131d   :  { %v4704_v4 = vpop.permute.xlu0 %4703 }
0x131e   :  { %4706 = vst.msk [vmem:[#allocation3] sm:$0xff] %vm37_vm0, %v4704_v4 }
0x1324   :  { %v4505_v5 = vpop.permute.xlu1 %4504 }
0x1325   :  { %v4712_v9 = vld [vmem:[#allocation3] sm:$0xff]  ;;  %v4507_v10 = vmul.f32 %v4505_v5, %v4488_v28 }
0x1326   :  { %4713 = vst.msk [vmem:[%s5697_s10] sm:$0xff] %vm37_vm0, %v4712_v9 }
0x1327   :  { %4509 = vrot.lane.b32.xlu2 %v4507_v10, %s4813_s30 }
0x1381   :  { %v4510_v48 = vpop.permute.xlu2 %4509 }
0x1382   :  { %v4511_v13 = vsel %vm37_vm0, %v4510_v48, 0  ;;  %4701 = vst.msk [vmem:[#allocation2] sm:$0xff] %vm37_vm0, %v4510_v48 }
0x1383   :  { %v4533_v14 = vand.u32 4294901760, %v4511_v13 }
0x1385   :  { %v4534_v15 = vsub.f32 %v4511_v13, %v4533_v14  ;;  %4579 = vmatmul.f32.vlgmr.msra.gmra.mxu3 %v4533_v14 }
0x1387   :  { %v4535_v16 = vand.u32 4294901760, %v4534_v15  ;;  %4609 = vmatmul.f32.vlgmr.msrb.gmra.mxu0 %v4534_v15 }
0x1389   :  { %v4536_v17 = vsub.f32 %v4534_v15, %v4535_v16  ;;  %v4710_v18 = vld [vmem:[#allocation2] sm:$0xff]  ;;  %4636 = vmatmul.f32.vlgmr.msrb.gmra.mxu1 %v4535_v16 }
0x138a   :  { %4711 = vst.msk [vmem:[%s5698_s9] sm:$0xff] %vm37_vm0, %v4710_v18 }
0x138b   :  { %v4537_v21 = vand.u32 4294901760, %v4536_v17 }
0x138d   :  { %4538 = vmatmul.f32.vlgmr.msra.gmra.mxu2 %v4537_v21  ;;  %4694 = vmatmul.f32.vlgmr.msrb.gmra.mxu3 %v4533_v14 }
0x1395   :  { %4669 = vmatmul.f32.vlgmr.msrb.gmra.mxu2 %v4533_v14 }
0x1404   :  { %v4610_v30 = vpop.f32.mrf.mxu0 }
0x1406   :  { %v4637_v43 = vpop.f32.mrf.mxu1 }
0x1408   :  { %v4580_v22 = vpop.f32.mrf.mxu3 }
0x1410   :  { %v4539_v23 = vpop.f32.mrf.mxu2  ;;  %v4695_v1 = vpop.f32.mrf.mxu3 }
0x1411   :  { %v4540_v24 = vadd.f32 %v5716_v38, %v4539_v23 }
0x1413   :  { %v4581_v25 = vadd.f32 %v4580_v22, %v4540_v24 }
0x1415   :  { %v4611_v39 = vadd.f32 %v4610_v30, %v4581_v25 }
0x1417   :  { %v4638_v62 = vadd.f32 %v4637_v43, %v4611_v39 }
0x1418   :  { %v4670_v63 = vpop.f32.mrf.mxu2 }
0x1419   :  { %v4671_v0 = vadd.f32 %v4670_v63, %v4638_v62 }
0x141b   :  { %v4696_v2 = vadd.f32 %v4695_v1, %v4671_v0 }
0x141d   :  { %4739 = vst [vmem:[%s5696_s8 + $0x38] sm:$0xff] %v4696_v2 }

</bundles_post_ra>
